<compile_context>
chip_gen: v5e
topology: v5e:2x2
jax: 0.10.0
libtpu: 0.0.40
codegen_flags: <defaults>
</compile_context>

<pallas_src>
import functools
import math

import jax
import jax.numpy as jnp
from jax.experimental import pallas as pl
from jax.experimental.pallas import tpu as pltpu


def _round_up(n, m):
    return (n + m - 1) // m * m


def gin_kernel(eps_ref, adj_ref, x_rhs_ref, x_row_ref, w1_ref, w2_ref, w3_ref,
               o_ref, acc_ref, *, residue):
    k = pl.program_id(1)

    @pl.when(k == 0)
    def _init():
        acc_ref[...] = jnp.zeros_like(acc_ref)

    # Aggregation: accumulate adj @ x over K tiles. adj is stored bf16 (0/1 values
    # are exact); upcast so the MXU matmul and the accumulator stay f32.
    adj = adj_ref[...].astype(jnp.float32)
    acc_ref[...] += jnp.dot(adj, x_rhs_ref[...],
                            preferred_element_type=jnp.float32)

    @pl.when(k == pl.num_programs(1) - 1)
    def _epilogue():
        x = x_row_ref[...]                      # [TM, F_in] row tile of x
        eps = eps_ref[0]                        # learnable scalar (3.0)
        y = acc_ref[...] + eps * x              # adj @ x + weight * x

        # MLPReadout: three bias-free linears, each followed by ReLU (weights resident).
        h = jnp.maximum(jnp.dot(y, w1_ref[...], preferred_element_type=jnp.float32), 0.0)
        h = jnp.maximum(jnp.dot(h, w2_ref[...], preferred_element_type=jnp.float32), 0.0)
        h = jnp.maximum(jnp.dot(h, w3_ref[...], preferred_element_type=jnp.float32), 0.0)

        if residue:                             # static: in_dim == out_dim
            h = h + x
        o_ref[...] = h


def graph_isomorphism_layer(x, adj, weight, w1, w2, w3, *, tm=256, tk=256):
    """x: [N, in_dim] f32, adj: [N, N], weight: [1] f32, w*: [in, out] f32."""
    N, in_dim = x.shape
    hid1 = w1.shape[1]
    hid2 = w2.shape[1]
    out_dim = w3.shape[1]
    residue = (in_dim == out_dim)

    # Lane-pad every feature dim to 128 (lane-dense matmuls / stores); row-pad N
    # so it divides both tile sizes.
    fi = _round_up(in_dim, 128)
    f1 = _round_up(hid1, 128)
    f2 = _round_up(hid2, 128)
    fo = _round_up(out_dim, 128)
    npad = _round_up(N, (tm * tk) // math.gcd(tm, tk))

    x_pad = jnp.zeros((npad, fi), jnp.float32).at[:N, :in_dim].set(
        x.astype(jnp.float32))
    adj_pad = jnp.zeros((npad, npad), jnp.bfloat16).at[:N, :N].set(
        adj.astype(jnp.bfloat16))                         # 0/1 -> bf16 is exact
    w1_pad = jnp.zeros((fi, f1), jnp.float32).at[:in_dim, :hid1].set(w1)
    w2_pad = jnp.zeros((f1, f2), jnp.float32).at[:hid1, :hid2].set(w2)
    w3_pad = jnp.zeros((f2, fo), jnp.float32).at[:hid2, :out_dim].set(w3)

    smem = pl.BlockSpec(memory_space=pltpu.MemorySpace.SMEM)
    in_specs = [
        smem,                                             # eps scalar
        pl.BlockSpec((tm, tk), lambda i, k: (i, k)),      # adj tile (streamed)
        pl.BlockSpec((tk, fi), lambda i, k: (k, 0)),      # x as matmul RHS
        pl.BlockSpec((tm, fi), lambda i, k: (i, 0)),      # x row tile (eps / residual)
        pl.BlockSpec((fi, f1), lambda i, k: (0, 0)),      # W1 (resident)
        pl.BlockSpec((f1, f2), lambda i, k: (0, 0)),      # W2 (resident)
        pl.BlockSpec((f2, fo), lambda i, k: (0, 0)),      # W3 (resident)
    ]
    out_spec = pl.BlockSpec((tm, fo), lambda i, k: (i, 0))

    out_pad = pl.pallas_call(
        functools.partial(gin_kernel, residue=residue),
        out_shape=jax.ShapeDtypeStruct((npad, fo), jnp.float32),
        grid=(npad // tm, npad // tk),
        in_specs=in_specs,
        out_specs=out_spec,
        scratch_shapes=[pltpu.VMEM((tm, fi), jnp.float32)],
        compiler_params=pltpu.CompilerParams(
            dimension_semantics=("parallel", "arbitrary")),
    )(weight.astype(jnp.float32), adj_pad, x_pad, x_pad,
      w1_pad, w2_pad, w3_pad)

    return out_pad[:N, :out_dim]


def _reference(x, adj, weight, w1, w2, w3):
    y = adj @ x + weight[0] * x
    y = jnp.maximum(y @ w1, 0.0)
    y = jnp.maximum(y @ w2, 0.0)
    y = jnp.maximum(y @ w3, 0.0)
    if x.shape[1] == w3.shape[1]:
        y = y + x
    return y


if __name__ == "__main__":
    # Small shapes consistent with the module: N nodes, in_dim == out_dim -> residual,
    # MLPReadout hidden dims 64 -> 32 (L=3).
    N, in_dim, out_dim, hid = 128, 32, 32, 64

    key = jax.random.PRNGKey(0)
    kx, kadj, k1, k2, k3 = jax.random.split(key, 5)

    x = jax.random.normal(kx, (N, in_dim), dtype=jnp.float32)
    # Dense 0/1 adjacency (dense stand-in for the sparse matrix).
    adj = (jax.random.uniform(kadj, (N, N)) < 0.1).astype(jnp.float32)

    # Deterministic parameter init (PyTorch Linear shapes: [out, in], bias=False;
    # stored here transposed as [in, out]).
    weight = jnp.array([3.0], dtype=jnp.float32)
    w1 = jax.random.normal(k1, (in_dim, hid), dtype=jnp.float32) / jnp.sqrt(in_dim)
    w2 = jax.random.normal(k2, (hid, hid // 2), dtype=jnp.float32) / jnp.sqrt(hid)
    w3 = jax.random.normal(k3, (hid // 2, out_dim), dtype=jnp.float32) / jnp.sqrt(hid // 2)

    out = graph_isomorphism_layer(x, adj, weight, w1, w2, w3)
    out = jax.block_until_ready(out)

    ref = _reference(x, adj, weight, w1, w2, w3)
    assert out.shape == (N, out_dim)
    assert jnp.allclose(out, ref, atol=1e-4, rtol=1e-4), "mismatch vs reference"

    print("KERNEL_OK")
</pallas_src>

<mosaic_0001>
module attributes {stable_mosaic.version = 11 : i64} {
  func.func @gin_kernel(%arg0: i32, %arg1: i32, %arg2: memref<1xf32, #tpu.memory_space<smem>>, %arg3: memref<256x256xbf16, #tpu.memory_space<vmem>>, %arg4: memref<256x128xf32, #tpu.memory_space<vmem>>, %arg5: memref<256x128xf32, #tpu.memory_space<vmem>>, %arg6: memref<128x128xf32, #tpu.memory_space<vmem>>, %arg7: memref<128x128xf32, #tpu.memory_space<vmem>>, %arg8: memref<128x128xf32, #tpu.memory_space<vmem>>, %arg9: memref<256x128xf32, #tpu.memory_space<vmem>>, %arg10: memref<256x128xf32, #tpu.memory_space<vmem>>) attributes {dimension_semantics = [#tpu.dimension_semantics<parallel>, #tpu.dimension_semantics<arbitrary>], iteration_bounds = array<i64: 1, 1>, scalar_prefetch = 0 : i64, scratch_operands = 1 : i64, tpu.core_type = #tpu.core_type<tc>, window_params = [{transform_indices = @transform_0, window_bounds = array<i64: 1>}, {transform_indices = @transform_1, window_bounds = array<i64: 256, 256>}, {transform_indices = @transform_2, window_bounds = array<i64: 256, 128>}, {transform_indices = @transform_3, window_bounds = array<i64: 256, 128>}, {pipeline_mode = #tpu.pipeline_mode<synchronous>, transform_indices = @transform_4, window_bounds = array<i64: 128, 128>}, {pipeline_mode = #tpu.pipeline_mode<synchronous>, transform_indices = @transform_5, window_bounds = array<i64: 128, 128>}, {pipeline_mode = #tpu.pipeline_mode<synchronous>, transform_indices = @transform_6, window_bounds = array<i64: 128, 128>}, {transform_indices = @transform_7, window_bounds = array<i64: 256, 128>}]} {
    %c0_i32 = arith.constant 0 : i32
    %0 = arith.cmpi eq, %arg1, %c0_i32 : i32
    %1 = arith.extui %0 : i1 to i32
    %c0_i32_0 = arith.constant 0 : i32
    %2 = arith.cmpi ne, %1, %c0_i32_0 : i32
    scf.if %2 {
      %cst_10 = arith.constant 0.000000e+00 : f32
      %13 = vector.broadcast %cst_10 : f32 to vector<256x128xf32>
      %c0_11 = arith.constant 0 : index
      %c0_12 = arith.constant 0 : index
      %14 = vector.load %arg10[%c0_11, %c0_12] : memref<256x128xf32, #tpu.memory_space<vmem>>, vector<256x128xf32>
      tpu.vector_store %arg10[%c0_11, %c0_12], %13 {strides = array<i32>} : memref<256x128xf32, #tpu.memory_space<vmem>>, vector<256x128xf32>,
    } else {
    }
    %c0 = arith.constant 0 : index
    %c0_1 = arith.constant 0 : index
    %3 = vector.load %arg3[%c0, %c0_1] : memref<256x256xbf16, #tpu.memory_space<vmem>>, vector<256x256xbf16>
    %4 = arith.extf %3 : vector<256x256xbf16> to vector<256x256xf32>
    %c0_2 = arith.constant 0 : index
    %c0_3 = arith.constant 0 : index
    %5 = vector.load %arg10[%c0_2, %c0_3] : memref<256x128xf32, #tpu.memory_space<vmem>>, vector<256x128xf32>
    %c0_4 = arith.constant 0 : index
    %c0_5 = arith.constant 0 : index
    %6 = vector.load %arg4[%c0_4, %c0_5] : memref<256x128xf32, #tpu.memory_space<vmem>>, vector<256x128xf32>
    %cst = arith.constant dense<0.000000e+00> : vector<256x128xf32>
    %7 = tpu.matmul %4, %6, %cst {dimension_numbers = #tpu.dot_dimension_numbers<[1], [0], [0], [1], [0, 0, 1, 1], [], []>} : vector<256x256xf32>, vector<256x128xf32>, vector<256x128xf32> -> vector<256x128xf32>
    %8 = arith.addf %5, %7 : vector<256x128xf32>
    %c0_6 = arith.constant 0 : index
    %c0_7 = arith.constant 0 : index
    %9 = vector.load %arg10[%c0_6, %c0_7] : memref<256x128xf32, #tpu.memory_space<vmem>>, vector<256x128xf32>
    tpu.vector_store %arg10[%c0_6, %c0_7], %8 {strides = array<i32>} : memref<256x128xf32, #tpu.memory_space<vmem>>, vector<256x128xf32>,
    %c0_i32_8 = arith.constant 0 : i32
    %10 = arith.cmpi eq, %arg1, %c0_i32_8 : i32
    %11 = arith.extui %10 : i1 to i32
    %c0_i32_9 = arith.constant 0 : i32
    %12 = arith.cmpi ne, %11, %c0_i32_9 : i32
    scf.if %12 {
      %c0_10 = arith.constant 0 : index
      %c0_11 = arith.constant 0 : index
      %13 = vector.load %arg5[%c0_10, %c0_11] : memref<256x128xf32, #tpu.memory_space<vmem>>, vector<256x128xf32>
      %c0_12 = arith.constant 0 : index
      %14 = memref.load %arg2[%c0_12] : memref<1xf32, #tpu.memory_space<smem>>
      %c0_13 = arith.constant 0 : index
      %c0_14 = arith.constant 0 : index
      %15 = vector.load %arg10[%c0_13, %c0_14] : memref<256x128xf32, #tpu.memory_space<vmem>>, vector<256x128xf32>
      %16 = vector.broadcast %14 : f32 to vector<256x128xf32>
      %17 = arith.mulf %16, %13 : vector<256x128xf32>
      %18 = arith.addf %15, %17 : vector<256x128xf32>
      %c0_15 = arith.constant 0 : index
      %c0_16 = arith.constant 0 : index
      %19 = vector.load %arg6[%c0_15, %c0_16] : memref<128x128xf32, #tpu.memory_space<vmem>>, vector<128x128xf32>
      %cst_17 = arith.constant dense<0.000000e+00> : vector<256x128xf32>
      %20 = tpu.matmul %18, %19, %cst_17 {dimension_numbers = #tpu.dot_dimension_numbers<[1], [0], [0], [1], [0, 0, 1, 1], [], []>} : vector<256x128xf32>, vector<128x128xf32>, vector<256x128xf32> -> vector<256x128xf32>
      %cst_18 = arith.constant 0.000000e+00 : f32
      %21 = vector.broadcast %cst_18 : f32 to vector<256x128xf32>
      %22 = arith.maximumf %20, %21 : vector<256x128xf32>
      %c0_19 = arith.constant 0 : index
      %c0_20 = arith.constant 0 : index
      %23 = vector.load %arg7[%c0_19, %c0_20] : memref<128x128xf32, #tpu.memory_space<vmem>>, vector<128x128xf32>
      %cst_21 = arith.constant dense<0.000000e+00> : vector<256x128xf32>
      %24 = tpu.matmul %22, %23, %cst_21 {dimension_numbers = #tpu.dot_dimension_numbers<[1], [0], [0], [1], [0, 0, 1, 1], [], []>} : vector<256x128xf32>, vector<128x128xf32>, vector<256x128xf32> -> vector<256x128xf32>
      %cst_22 = arith.constant 0.000000e+00 : f32
      %25 = vector.broadcast %cst_22 : f32 to vector<256x128xf32>
      %26 = arith.maximumf %24, %25 : vector<256x128xf32>
      %c0_23 = arith.constant 0 : index
      %c0_24 = arith.constant 0 : index
      %27 = vector.load %arg8[%c0_23, %c0_24] : memref<128x128xf32, #tpu.memory_space<vmem>>, vector<128x128xf32>
      %cst_25 = arith.constant dense<0.000000e+00> : vector<256x128xf32>
      %28 = tpu.matmul %26, %27, %cst_25 {dimension_numbers = #tpu.dot_dimension_numbers<[1], [0], [0], [1], [0, 0, 1, 1], [], []>} : vector<256x128xf32>, vector<128x128xf32>, vector<256x128xf32> -> vector<256x128xf32>
      %cst_26 = arith.constant 0.000000e+00 : f32
      %29 = vector.broadcast %cst_26 : f32 to vector<256x128xf32>
      %30 = arith.maximumf %28, %29 : vector<256x128xf32>
      %31 = arith.addf %30, %13 : vector<256x128xf32>
      %c0_27 = arith.constant 0 : index
      %c0_28 = arith.constant 0 : index
      %32 = vector.load %arg9[%c0_27, %c0_28] : memref<256x128xf32, #tpu.memory_space<vmem>>, vector<256x128xf32>
      tpu.vector_store %arg9[%c0_27, %c0_28], %31 {strides = array<i32>} : memref<256x128xf32, #tpu.memory_space<vmem>>, vector<256x128xf32>,
    } else {
    }
    return
  }
  func.func @transform_0(%arg0: i32, %arg1: i32) -> i32 {
    %c0_i32 = arith.constant 0 : i32
    %c0_i32_0 = arith.constant 0 : i32
    return %c0_i32 : i32
  }
  func.func @transform_1(%arg0: i32, %arg1: i32) -> (i32, i32) {
    %c0_i32 = arith.constant 0 : i32
    return %arg0, %arg1 : i32, i32
  }
  func.func @transform_2(%arg0: i32, %arg1: i32) -> (i32, i32) {
    %c0_i32 = arith.constant 0 : i32
    %c0_i32_0 = arith.constant 0 : i32
    return %arg1, %c0_i32 : i32, i32
  }
  func.func @transform_3(%arg0: i32, %arg1: i32) -> (i32, i32) {
    %c0_i32 = arith.constant 0 : i32
    %c0_i32_0 = arith.constant 0 : i32
    return %arg0, %c0_i32 : i32, i32
  }
  func.func @transform_4(%arg0: i32, %arg1: i32) -> (i32, i32) {
    %c0_i32 = arith.constant 0 : i32
    %c0_i32_0 = arith.constant 0 : i32
    %c0_i32_1 = arith.constant 0 : i32
    return %c0_i32, %c0_i32_0 : i32, i32
  }
  func.func @transform_5(%arg0: i32, %arg1: i32) -> (i32, i32) {
    %c0_i32 = arith.constant 0 : i32
    %c0_i32_0 = arith.constant 0 : i32
    %c0_i32_1 = arith.constant 0 : i32
    return %c0_i32, %c0_i32_0 : i32, i32
  }
  func.func @transform_6(%arg0: i32, %arg1: i32) -> (i32, i32) {
    %c0_i32 = arith.constant 0 : i32
    %c0_i32_0 = arith.constant 0 : i32
    %c0_i32_1 = arith.constant 0 : i32
    return %c0_i32, %c0_i32_0 : i32, i32
  }
  func.func @transform_7(%arg0: i32, %arg1: i32) -> (i32, i32) {
    %c0_i32 = arith.constant 0 : i32
    %c0_i32_0 = arith.constant 0 : i32
    return %arg0, %c0_i32 : i32, i32
  }
}

</mosaic_0001>

<bundles_post_ra>
// kernel: tpu_custom_call.1
= control target key start
LH: loop header
LB: loop body
LE: loop exit
PB: predicated region body
PF: predicated region fallthrough
CT: control target
= control target key end

     0   :  { %13 = vsyncpa [#allocation5], 0  ;;  %s1941_s0 = inlined_call_operand.<no memory space> [shape: f32[1], index: 0, kind: input, shape index: {}]   ;;  %s1942_s1 = inlined_call_operand.hbm [shape: bf16[256,256], index: 1, kind: input, shape index: {}]   ;;  %s1943_s2 = inlined_call_operand.hbm [shape: f32[256,128], index: 2, kind: input, shape index: {}]   ;;  %s1944_s3 = inlined_call_operand.hbm [shape: f32[256,128], index: 3, kind: input, shape index: {}]   ;;  %s1945_s4 = inlined_call_operand.hbm [shape: f32[128,128], index: 4, kind: input, shape index: {}]   ;;  %s1946_s5 = inlined_call_operand.hbm [shape: f32[128,128], index: 5, kind: input, shape index: {}]   ;;  %s1947_s6 = inlined_call_operand.hbm [shape: f32[128,128], index: 6, kind: input, shape index: {}]   ;;  %s1948_s7 = inlined_call_operand.hbm [shape: f32[256,128], index: 7, kind: output, shape index: {}]  }
   0x1   :  { %14 = vsyncpa [#allocation8], 0 }
   0x2   :  { %15 = vsyncpa [#allocation11], 0 }
   0x3   :  { %16 = vsyncpa [#allocation14], 0 }
   0x4   :  { %17 = vsyncpa [#allocation6], 0  ;;  %s37_s26 = sshll.u32 %s1943_s2, 4  ;;  %s1545_s27 = smov [#allocation7]   ;;  %s38_s26 = int_to_ptr.hbm [resolvable:$true] %s37_s26 }
   0x5   :  { %s39_s28 = sshll.u32 %s1545_s27, 4  ;;  %s63_s8 = sshll.u32 %s1945_s4, 4  ;;  %s40_s28 = int_to_ptr.vmem [resolvable:$true] %s39_s28  ;;  %s64_s8 = int_to_ptr.hbm [resolvable:$true] %s63_s8 }
   0x6   :  { %s1546_s9 = smov 128   ;;  %s1547_s10 = smov 8  }
   0x7   :  { %45 = dma.hbm_to_vmem [thread:$0]  %s38_s26, 4096, %s40_s28, [#allocation8], %s1546_s9, %s1546_s9, %s1547_s10  }
   0x8   :  { %s1548_s11 = smov [#allocation10]   ;;  %s24_s2 = sshll.u32 %s1942_s1, 4  ;;  %s25_s2 = int_to_ptr.hbm [resolvable:$true] %s24_s2 }
   0x9   :  { %s65_s12 = sshll.u32 %s1548_s11, 4  ;;  %s50_s16 = sshll.u32 %s1944_s3, 4  ;;  %s66_s12 = int_to_ptr.vmem [resolvable:$true] %s65_s12  ;;  %s51_s16 = int_to_ptr.hbm [resolvable:$true] %s50_s16 }
   0xa   :  { %71 = dma.hbm_to_vmem [thread:$0]  %s64_s8, 2048, %s66_s12, [#allocation11], %s1546_s9, %s1546_s9, %s1547_s10  }
   0xb   :  { %s1549_s17 = smov [#allocation4]   ;;  %s1550_s19 = smov [#allocation9]  }
   0xc   :  { %s26_s18 = sshll.u32 %s1549_s17, 4  ;;  %s52_s1 = sshll.u32 %s1550_s19, 4  ;;  %s27_s18 = int_to_ptr.vmem [resolvable:$true] %s26_s18  ;;  %s53_s1 = int_to_ptr.vmem [resolvable:$true] %s52_s1 }
   0xd   :  { %32 = dma.hbm_to_vmem [thread:$0]  %s25_s2, 4096, %s27_s18, [#allocation5], %s1546_s9, %s1546_s9, %s1547_s10  }
   0xe   :  { %s76_s22 = sshll.u32 %s1946_s5, 4  ;;  %s89_s24 = sshll.u32 %s1947_s6, 4  ;;  %s77_s22 = int_to_ptr.hbm [resolvable:$true] %s76_s22  ;;  %s90_s24 = int_to_ptr.hbm [resolvable:$true] %s89_s24 }
   0xf   :  { %58 = dma.hbm_to_vmem [thread:$0]  %s51_s16, 4096, %s53_s1, [#allocation8], %s1546_s9, %s1546_s9, %s1547_s10  }
  0x10   :  { %s1551_s25 = smov [#allocation12]   ;;  %s1552_s27 = smov [#allocation13]  }
  0x11   :  { %s78_s26 = sshll.u32 %s1551_s25, 4  ;;  %s91_s5 = sshll.u32 %s1552_s27, 4  ;;  %s79_s26 = int_to_ptr.vmem [resolvable:$true] %s78_s26  ;;  %s92_s5 = int_to_ptr.vmem [resolvable:$true] %s91_s5 }
  0x12   :  { %84 = dma.hbm_to_vmem [thread:$0]  %s77_s22, 2048, %s79_s26, [#allocation11], %s1546_s9, %s1546_s9, %s1547_s10  }
  0x13   :  { %97 = dma.hbm_to_vmem [thread:$0]  %s90_s24, 2048, %s92_s5, [#allocation14], %s1546_s9, %s1546_s9, %s1547_s10  }
  0x14   :  { %1535 = dma.done.wait [#allocation5], 4096  }
  0x15   :  { %1536 = vsyncadd [#allocation5], 4294963200 }
  0x16   :  { %1537 = dma.done.wait [#allocation8], 8192  }
  0x17   :  { %1538 = vsyncadd [#allocation8], 4294959104 }
  0x18   :  { %1539 = dma.done.wait [#allocation11], 4096  }
  0x19   :  { %1540 = vsyncadd [#allocation11], 4294963200 }
  0x1a   :  { %1541 = dma.done.wait [#allocation14], 2048  }
  0x1b   :  { %1542 = vsyncadd [#allocation14], 4294965248  ;;  %v301_v0 = vld [vmem:[#allocation7 + $0x78] sm:$0xff]  ;;  %v300_v1 = vld [vmem:[#allocation7 + $0x70] sm:$0xff]  ;;  %s1294_s11 = sshll.u32 %s1948_s7, 4  ;;  %s1295_s11 = int_to_ptr.hbm [resolvable:$true] %s1294_s11 }
  0x1c   :  { %1310 = vmatpush.msra.mxu1 %v301_v0  ;;  %318 = vmatpush.msra.mxu0 %v301_v0  ;;  %v299_v2 = vld [vmem:[#allocation7 + $0x68] sm:$0xff]  ;;  %v298_v3 = vld [vmem:[#allocation7 + $0x60] sm:$0xff]  ;;  %v297_v4 = vld [vmem:[#allocation7 + $0x58] sm:$0xff] }
  0x1d   :  { %1311 = vmatpush.msra.mxu2 %v301_v0  ;;  %1312 = vmatpush.msra.mxu3 %v301_v0  ;;  %v296_v5 = vld [vmem:[#allocation7 + $0x50] sm:$0xff]  ;;  %v295_v6 = vld [vmem:[#allocation7 + $0x48] sm:$0xff]  ;;  %v294_v7 = vld [vmem:[#allocation7 + $0x40] sm:$0xff] }
  0x1e   :  { %1313 = vmatpush.msra.mxu1 %v300_v1  ;;  %319 = vmatpush.msra.mxu0 %v300_v1  ;;  %v293_v8 = vld [vmem:[#allocation7 + $0x38] sm:$0xff]  ;;  %v292_v9 = vld [vmem:[#allocation7 + $0x30] sm:$0xff]  ;;  %v291_v10 = vld [vmem:[#allocation7 + $0x28] sm:$0xff] }
  0x1f   :  { %1314 = vmatpush.msra.mxu2 %v300_v1  ;;  %1315 = vmatpush.msra.mxu3 %v300_v1  ;;  %v290_v11 = vld [vmem:[#allocation7 + $0x20] sm:$0xff]  ;;  %v289_v12 = vld [vmem:[#allocation7 + $0x18] sm:$0xff]  ;;  %v288_v13 = vld [vmem:[#allocation7 + $0x10] sm:$0xff] }
  0x20   :  { %1316 = vmatpush.msra.mxu1 %v299_v2  ;;  %320 = vmatpush.msra.mxu0 %v299_v2  ;;  %v1630_v14 = vld [vmem:[#allocation4 + $0x40] sm:$0xff]  ;;  %v287_v15 = vld [vmem:[#allocation7 + $0x8] sm:$0xff]  ;;  %v317_v18 = vld [vmem:[#allocation7 + $0xf8] sm:$0xff] }
  0x21   :  { %1317 = vmatpush.msra.mxu2 %v299_v2  ;;  %1318 = vmatpush.msra.mxu3 %v299_v2  ;;  %v286_v16 = vld [vmem:[#allocation7] sm:$0xff]  ;;  %v206_v17 = vunpack.c.l.bf16 %v1630_v14  ;;  %v316_v19 = vld [vmem:[#allocation7 + $0xf0] sm:$0xff]  ;;  %v1633_v20 = vld [vmem:[#allocation4 + $0x48] sm:$0xff] }
  0x22   :  { %1319 = vmatpush.msra.mxu1 %v298_v3  ;;  %321 = vmatpush.msra.mxu0 %v298_v3  ;;  %v315_v21 = vld [vmem:[#allocation7 + $0xe8] sm:$0xff]  ;;  %v208_v22 = vunpack.c.l.bf16 %v1633_v20  ;;  %v314_v23 = vld [vmem:[#allocation7 + $0xe0] sm:$0xff]  ;;  %v313_v24 = vld [vmem:[#allocation7 + $0xd8] sm:$0xff] }
  0x23   :  { %1320 = vmatpush.msra.mxu2 %v298_v3  ;;  %1321 = vmatpush.msra.mxu3 %v298_v3  ;;  %v312_v25 = vld [vmem:[#allocation7 + $0xd0] sm:$0xff]  ;;  %v311_v27 = vld [vmem:[#allocation7 + $0xc8] sm:$0xff]  ;;  %v310_v29 = vld [vmem:[#allocation7 + $0xc0] sm:$0xff] }
  0x24   :  { %1322 = vmatpush.msra.mxu1 %v297_v4  ;;  %322 = vmatpush.msra.mxu0 %v297_v4  ;;  %v1636_v26 = vld [vmem:[#allocation4 + $0x50] sm:$0xff]  ;;  %v309_v30 = vld [vmem:[#allocation7 + $0xb8] sm:$0xff]  ;;  %v307_v33 = vld [vmem:[#allocation7 + $0xa8] sm:$0xff] }
  0x25   :  { %1323 = vmatpush.msra.mxu2 %v297_v4  ;;  %1324 = vmatpush.msra.mxu3 %v297_v4  ;;  %v210_v28 = vunpack.c.l.bf16 %v1636_v26  ;;  %v308_v31 = vld [vmem:[#allocation7 + $0xb0] sm:$0xff]  ;;  %v1639_v32 = vld [vmem:[#allocation4 + $0x58] sm:$0xff]  ;;  %v306_v35 = vld [vmem:[#allocation7 + $0xa0] sm:$0xff] }
  0x26   :  { %1325 = vmatpush.msra.mxu1 %v296_v5  ;;  %323 = vmatpush.msra.mxu0 %v296_v5  ;;  %v212_v34 = vunpack.c.l.bf16 %v1639_v32  ;;  %v305_v36 = vld [vmem:[#allocation7 + $0x98] sm:$0xff]  ;;  %v304_v37 = vld [vmem:[#allocation7 + $0x90] sm:$0xff]  ;;  %v158_v38 = vld [vmem:[#allocation4] sm:$0xff] }
  0x27   :  { %1326 = vmatpush.msra.mxu2 %v296_v5  ;;  %1327 = vmatpush.msra.mxu3 %v296_v5  ;;  %v1642_v39 = vld [vmem:[#allocation4 + $0x60] sm:$0xff]  ;;  %v190_v40 = vunpack.c.l.bf16 %v158_v38  ;;  %v303_v41 = vld [vmem:[#allocation7 + $0x88] sm:$0xff]  ;;  %v160_v48 = vld [vmem:[#allocation4 + $0x10] sm:$0xff]  ;;  %v191_v58 = vunpack.c.h.bf16 %v158_v38  ;;  %v211_v38 = vunpack.c.h.bf16 %v1636_v26 }
  0x28   :  { %1328 = vmatpush.msra.mxu1 %v295_v6  ;;  %324 = vmatpush.msra.mxu0 %v295_v6  ;;  %v214_v42 = vunpack.c.l.bf16 %v1642_v39  ;;  %v302_v43 = vld [vmem:[#allocation7 + $0x80] sm:$0xff]  ;;  %v159_v44 = vld [vmem:[#allocation4 + $0x8] sm:$0xff]  ;;  %v1648_v49 = vld [vmem:[#allocation4 + $0x70] sm:$0xff]  ;;  %v194_v50 = vunpack.c.l.bf16 %v160_v48  ;;  %v195_v0 = vunpack.c.h.bf16 %v160_v48 }
  0x29   :  { %1329 = vmatpush.msra.mxu2 %v295_v6  ;;  %1330 = vmatpush.msra.mxu3 %v295_v6  ;;  %v1645_v45 = vld [vmem:[#allocation4 + $0x68] sm:$0xff]  ;;  %v192_v46 = vunpack.c.l.bf16 %v159_v44  ;;  %v218_v51 = vunpack.c.l.bf16 %v1648_v49  ;;  %v161_v52 = vld [vmem:[#allocation4 + $0x18] sm:$0xff]  ;;  %v162_v56 = vld [vmem:[#allocation4 + $0x20] sm:$0xff]  ;;  %v193_v61 = vunpack.c.h.bf16 %v159_v44  ;;  %v213_v44 = vunpack.c.h.bf16 %v1639_v32 }
  0x2a   :  { %1331 = vmatpush.msra.mxu1 %v294_v7  ;;  %325 = vmatpush.msra.mxu0 %v294_v7  ;;  %v216_v47 = vunpack.c.l.bf16 %v1645_v45  ;;  %v1651_v53 = vld [vmem:[#allocation4 + $0x78] sm:$0xff]  ;;  %v196_v54 = vunpack.c.l.bf16 %v161_v52  ;;  %v198_v57 = vunpack.c.l.bf16 %v162_v56  ;;  %v163_v59 = vld [vmem:[#allocation4 + $0x28] sm:$0xff]  ;;  %v164_v62 = vld [vmem:[#allocation4 + $0x30] sm:$0xff]  ;;  %v197_v3 = vunpack.c.h.bf16 %v161_v52 }
  0x2b   :  { %1332 = vmatpush.msra.mxu2 %v294_v7  ;;  %1333 = vmatpush.msra.mxu3 %v294_v7  ;;  %v220_v55 = vunpack.c.l.bf16 %v1651_v53  ;;  %v200_v60 = vunpack.c.l.bf16 %v163_v59  ;;  %v202_v63 = vunpack.c.l.bf16 %v164_v62  ;;  %v165_v1 = vld [vmem:[#allocation4 + $0x38] sm:$0xff]  ;;  %v199_v4 = vunpack.c.h.bf16 %v162_v56  ;;  %v1654_v5 = vld [vmem:[#allocation4 + $0x80] sm:$0xff] }
  0x2c   :  { %1334 = vmatpush.msra.mxu1 %v293_v8  ;;  %326 = vmatpush.msra.mxu0 %v293_v8  ;;  %v204_v2 = vunpack.c.l.bf16 %v165_v1  ;;  %v222_v6 = vunpack.c.l.bf16 %v1654_v5  ;;  %v756_v7 = vld [vmem:[#allocation10 + $0x78] sm:$0xff]  ;;  %v217_v32 = vunpack.c.h.bf16 %v1645_v45  ;;  %v219_v56 = vunpack.c.h.bf16 %v1648_v49 }
  0x2d   :  { %1335 = vmatpush.msra.mxu2 %v293_v8  ;;  %1336 = vmatpush.msra.mxu3 %v293_v8  ;;  %v201_v8 = vunpack.c.h.bf16 %v163_v59  ;;  %v1687_v48 = vld [vmem:[#allocation4 + $0xb8] sm:$0xff]  ;;  %v221_v59 = vunpack.c.h.bf16 %v1651_v53  ;;  %v1707_v45 = vstv %s1941_s0  ;;  %v1712_v53 = vld [vmem:[#allocation9 + $0x8] sm:$0xff]  ;;  %s1553_s0 = smov [#allocation15]  }
  0x2e   :  { %1337 = vmatpush.msra.mxu1 %v292_v9  ;;  %327 = vmatpush.msra.mxu0 %v292_v9  ;;  %v236_v26 = vunpack.c.l.bf16 %v1687_v48  ;;  %s1292_s29 = sshll.u32 %s1553_s0, 4  ;;  %s1293_s29 = int_to_ptr.vmem [resolvable:$true] %s1292_s29 }
  0x2f   :  { %1338 = vmatpush.msra.mxu2 %v292_v9  ;;  %1339 = vmatpush.msra.mxu3 %v292_v9  ;;  %v755_v9 = vld [vmem:[#allocation10 + $0x70] sm:$0xff] }
  0x30   :  { %1340 = vmatpush.msra.mxu1 %v291_v10  ;;  %328 = vmatpush.msra.mxu0 %v291_v10 }
  0x31   :  { %1341 = vmatpush.msra.mxu2 %v291_v10  ;;  %1342 = vmatpush.msra.mxu3 %v291_v10  ;;  %v1657_v10 = vld [vmem:[#allocation4 + $0x88] sm:$0xff] }
  0x32   :  { %1343 = vmatpush.msra.mxu1 %v290_v11  ;;  %329 = vmatpush.msra.mxu0 %v290_v11 }
  0x33   :  { %1344 = vmatpush.msra.mxu2 %v290_v11  ;;  %1345 = vmatpush.msra.mxu3 %v290_v11  ;;  %v224_v11 = vunpack.c.l.bf16 %v1657_v10 }
  0x34   :  { %1346 = vmatpush.msra.mxu1 %v289_v12  ;;  %330 = vmatpush.msra.mxu0 %v289_v12 }
  0x35   :  { %1347 = vmatpush.msra.mxu2 %v289_v12  ;;  %1348 = vmatpush.msra.mxu3 %v289_v12  ;;  %v754_v12 = vld [vmem:[#allocation10 + $0x68] sm:$0xff] }
  0x36   :  { %1349 = vmatpush.msra.mxu1 %v288_v13  ;;  %331 = vmatpush.msra.mxu0 %v288_v13 }
  0x37   :  { %1350 = vmatpush.msra.mxu2 %v288_v13  ;;  %1351 = vmatpush.msra.mxu3 %v288_v13  ;;  %v203_v13 = vunpack.c.h.bf16 %v164_v62  ;;  %v223_v62 = vunpack.c.h.bf16 %v1654_v5 }
  0x38   :  { %1352 = vmatpush.msra.mxu1 %v287_v15  ;;  %332 = vmatpush.msra.mxu0 %v287_v15 }
  0x39   :  { %1353 = vmatpush.msra.mxu2 %v287_v15  ;;  %1354 = vmatpush.msra.mxu3 %v287_v15  ;;  %v753_v15 = vld [vmem:[#allocation10 + $0x60] sm:$0xff] }
  0x3a   :  { %1355 = vmatpush.msra.mxu1 %v286_v16  ;;  %333 = vmatpush.msra.mxu0 %v286_v16 }
  0x3b   :  { %358 = vmatmul.f32.vlgmr.msra.gmra.mxu1 %v206_v17  ;;  %1356 = vmatpush.msra.mxu2 %v286_v16 }
  0x3c   :  { %431 = vmatpush.msrb.mxu1 %v317_v18  ;;  %1357 = vmatpush.msra.mxu3 %v286_v16  ;;  %v1660_v16 = vld [vmem:[#allocation4 + $0x90] sm:$0xff]  ;;  %v752_v18 = vld [vmem:[#allocation10 + $0x58] sm:$0xff] }
  0x3d   :  { %334 = vmatmul.f32.vlgmr.msra.gmra.mxu0 %v190_v40  ;;  %757 = vmatpush.msrb.mxu2 %v756_v7  ;;  %v226_v17 = vunpack.c.l.bf16 %v1660_v16 }
  0x3e   :  { %432 = vmatpush.msrb.mxu1 %v316_v19  ;;  %382 = vmatmul.f32.vlgmr.msra.gmra.mxu2 %v222_v6  ;;  %v205_v19 = vunpack.c.h.bf16 %v165_v1 }
  0x3f   :  { %758 = vmatpush.msrb.mxu2 %v755_v9 }
  0x40   :  { %433 = vmatpush.msrb.mxu1 %v315_v21  ;;  %v751_v21 = vld [vmem:[#allocation10 + $0x50] sm:$0xff] }
  0x41   :  { %759 = vmatpush.msrb.mxu2 %v754_v12 }
  0x42   :  { %434 = vmatpush.msrb.mxu1 %v314_v23 }
  0x43   :  { %361 = vmatmul.f32.gmra.mxu1 %v208_v22  ;;  %760 = vmatpush.msrb.mxu2 %v753_v15  ;;  %v1663_v22 = vld [vmem:[#allocation4 + $0x98] sm:$0xff] }
  0x44   :  { %435 = vmatpush.msrb.mxu1 %v313_v24  ;;  %v228_v23 = vunpack.c.l.bf16 %v1663_v22  ;;  %v750_v24 = vld [vmem:[#allocation10 + $0x48] sm:$0xff] }
  0x45   :  { %337 = vmatmul.f32.gmra.mxu0 %v192_v46  ;;  %761 = vmatpush.msrb.mxu2 %v752_v18  ;;  %v229_v18 = vunpack.c.h.bf16 %v1663_v22 }
  0x46   :  { %436 = vmatpush.msrb.mxu1 %v312_v25  ;;  %385 = vmatmul.f32.gmra.mxu2 %v224_v11  ;;  %v207_v25 = vunpack.c.h.bf16 %v1630_v14  ;;  %v227_v11 = vunpack.c.h.bf16 %v1660_v16 }
  0x47   :  { %762 = vmatpush.msrb.mxu2 %v751_v21 }
  0x48   :  { %437 = vmatpush.msrb.mxu1 %v311_v27 }
  0x49   :  { %763 = vmatpush.msrb.mxu2 %v750_v24 }
  0x4a   :  { %438 = vmatpush.msrb.mxu1 %v310_v29  ;;  %v1669_v29 = vld [vmem:[#allocation4 + $0xa0] sm:$0xff] }
  0x4b   :  { %364 = vmatmul.f32.gmra.mxu1 %v210_v28  ;;  %v749_v28 = vld [vmem:[#allocation10 + $0x40] sm:$0xff] }
  0x4c   :  { %439 = vmatpush.msrb.mxu1 %v309_v30  ;;  %764 = vmatpush.msrb.mxu2 %v749_v28  ;;  %v230_v30 = vunpack.c.l.bf16 %v1669_v29 }
  0x4d   :  { %340 = vmatmul.f32.gmra.mxu0 %v194_v50  ;;  %v742_v50 = vld [vmem:[#allocation10 + $0x8] sm:$0xff] }
  0x4e   :  { %440 = vmatpush.msrb.mxu1 %v308_v31  ;;  %388 = vmatmul.f32.gmra.mxu2 %v226_v17  ;;  %v748_v31 = vld [vmem:[#allocation10 + $0x38] sm:$0xff] }
  0x4f   :  { %765 = vmatpush.msrb.mxu2 %v748_v31  ;;  %v1722_v17 = vld [vmem:[#allocation9 + $0x18] sm:$0xff]  ;;  %v231_v31 = vunpack.c.h.bf16 %v1669_v29 }
  0x50   :  { %441 = vmatpush.msrb.mxu1 %v307_v33  ;;  %v209_v33 = vunpack.c.h.bf16 %v1633_v20 }
  0x52   :  { %442 = vmatpush.msrb.mxu1 %v306_v35  ;;  %v747_v35 = vld [vmem:[#allocation10 + $0x30] sm:$0xff] }
  0x53   :  { %367 = vmatmul.f32.gmra.mxu1 %v212_v34  ;;  %766 = vmatpush.msrb.mxu2 %v747_v35 }
  0x54   :  { %443 = vmatpush.msrb.mxu1 %v305_v36  ;;  %v1675_v36 = vld [vmem:[#allocation4 + $0xa8] sm:$0xff] }
  0x55   :  { %343 = vmatmul.f32.gmra.mxu0 %v196_v54  ;;  %v232_v14 = vunpack.c.l.bf16 %v1675_v36  ;;  %v741_v54 = vld [vmem:[#allocation10] sm:$0xff] }
  0x56   :  { %444 = vmatpush.msrb.mxu1 %v304_v37  ;;  %391 = vmatmul.f32.gmra.mxu2 %v228_v23  ;;  %v746_v37 = vld [vmem:[#allocation10 + $0x28] sm:$0xff] }
  0x57   :  { %767 = vmatpush.msrb.mxu2 %v746_v37  ;;  %v1735_v37 = vld [vmem:[#allocation4 + $0xc8] sm:$0xff] }
  0x58   :  { %445 = vmatpush.msrb.mxu1 %v303_v41  ;;  %v745_v41 = vld [vmem:[#allocation10 + $0x20] sm:$0xff] }
  0x59   :  { %768 = vmatpush.msrb.mxu2 %v745_v41  ;;  %v240_v41 = vunpack.c.l.bf16 %v1735_v37 }
  0x5a   :  { %446 = vmatpush.msrb.mxu1 %v302_v43  ;;  %v744_v43 = vld [vmem:[#allocation10 + $0x18] sm:$0xff] }
  0x5b   :  { %370 = vmatmul.f32.gmra.mxu1 %v214_v42  ;;  %v1681_v42 = vld [vmem:[#allocation4 + $0xb0] sm:$0xff]  ;;  %769 = vmatpush.msrb.mxu2 %v744_v43  ;;  %v233_v43 = vunpack.c.h.bf16 %v1675_v36 }
  0x5c   :  { %v234_v20 = vunpack.c.l.bf16 %v1681_v42  ;;  %v235_v36 = vunpack.c.h.bf16 %v1681_v42  ;;  %v237_v42 = vunpack.c.h.bf16 %v1687_v48  ;;  %v912_v48 = vld [vmem:[#allocation12 + $0x50] sm:$0xff] }
  0x5d   :  { %346 = vmatmul.f32.gmra.mxu0 %v198_v57 }
  0x5e   :  { %394 = vmatmul.f32.gmra.mxu2 %v230_v30  ;;  %v1730_v30 = vld [vmem:[#allocation9 + $0x20] sm:$0xff] }
  0x5f   :  { %v681_v22 = vmul.f32 %v1707_v45, %v1730_v30 }
  0x63   :  { %373 = vmatmul.f32.gmra.mxu1 %v216_v47  ;;  %v743_v47 = vld [vmem:[#allocation10 + $0x10] sm:$0xff] }
  0x64   :  { %770 = vmatpush.msrb.mxu2 %v743_v47 }
  0x65   :  { %349 = vmatmul.f32.gmra.mxu0 %v200_v60 }
  0x66   :  { %397 = vmatmul.f32.gmra.mxu2 %v232_v14 }
  0x67   :  { %771 = vmatpush.msrb.mxu2 %v742_v50 }
  0x69   :  { %772 = vmatpush.msrb.mxu2 %v741_v54 }
  0x6b   :  { %376 = vmatmul.f32.gmra.mxu1 %v218_v51  ;;  %v215_v51 = vunpack.c.h.bf16 %v1642_v39 }
  0x6d   :  { %352 = vmatmul.f32.gmra.mxu0 %v202_v63 }
  0x6e   :  { %400 = vmatmul.f32.gmra.mxu2 %v234_v20  ;;  %v1738_v20 = vld [vmem:[#allocation9 + $0x28] sm:$0xff] }
  0x6f   :  { %v682_v29 = vmul.f32 %v1707_v45, %v1738_v20 }
  0x73   :  { %379 = vmatmul.f32.gmra.mxu1 %v220_v55 }
  0x75   :  { %355 = vmatmul.f32.gmra.mxu0 %v204_v2 }
  0x76   :  { %403 = vmatmul.f32.gmra.mxu2 %v236_v26  ;;  %v1743_v26 = vld [vmem:[#allocation4 + $0xd0] sm:$0xff] }
  0x77   :  { %v242_v54 = vunpack.c.l.bf16 %v1743_v26 }
  0x7b   :  { %447 = vmatmul.f32.vlgmr.msrb.gmra.mxu1 %v191_v58 }
  0x83   :  { %450 = vmatmul.f32.gmra.mxu1 %v193_v61  ;;  %v1702_v61 = vld [vmem:[#allocation9] sm:$0xff] }
  0x84   :  { %v677_v49 = vmul.f32 %v1707_v45, %v1702_v61 }
  0x8b   :  { %453 = vmatmul.f32.gmra.mxu1 %v195_v0 }
  0x93   :  { %456 = vmatmul.f32.gmra.mxu1 %v197_v3  ;;  %v225_v3 = vunpack.c.h.bf16 %v1657_v10 }
  0x9b   :  { %459 = vmatmul.f32.gmra.mxu1 %v199_v4  ;;  %v678_v4 = vmul.f32 %v1707_v45, %v1712_v53 }
  0xa3   :  { %462 = vmatmul.f32.gmra.mxu1 %v201_v8  ;;  %v1717_v8 = vld [vmem:[#allocation9 + $0x10] sm:$0xff] }
  0xa4   :  { %v679_v12 = vmul.f32 %v1707_v45, %v1717_v8 }
  0xab   :  { %465 = vmatmul.f32.gmra.mxu1 %v203_v13 }
  0xb3   :  { %468 = vmatmul.f32.gmra.mxu1 %v205_v19  ;;  %v680_v19 = vmul.f32 %v1707_v45, %v1722_v17 }
  0xb8   :  { %v1667_v27 = vpop.f32.mrf.mxu1 }
  0xba   :  { %v335_v58 = vpop.f32.mrf.mxu0 }
  0xbb   :  { %471 = vmatmul.f32.gmra.mxu1 %v207_v25  ;;  %v1727_v25 = vld [vmem:[#allocation4 + $0xc0] sm:$0xff] }
  0xbc   :  { %v238_v28 = vunpack.c.l.bf16 %v1727_v25 }
  0xbe   :  { %406 = vmatmul.f32.vlgmr.msra.gmra.mxu3 %v238_v28 }
  0xc0   :  { %v1673_v34 = vpop.f32.mrf.mxu1 }
  0xc2   :  { %v338_v39 = vpop.f32.mrf.mxu0 }
  0xc3   :  { %474 = vmatmul.f32.gmra.mxu1 %v209_v33 }
  0xc6   :  { %409 = vmatmul.f32.gmra.mxu3 %v240_v41  ;;  %v1781_v41 = vld [vmem:[#allocation4 + $0xf0] sm:$0xff] }
  0xc8   :  { %v1679_v40 = vpop.f32.mrf.mxu1 }
  0xca   :  { %v341_v2 = vpop.f32.mrf.mxu0 }
  0xcb   :  { %477 = vmatmul.f32.gmra.mxu1 %v211_v38 }
  0xce   :  { %412 = vmatmul.f32.gmra.mxu3 %v242_v54 }
  0xd0   :  { %v1685_v46 = vpop.f32.mrf.mxu1 }
  0xd2   :  { %v344_v9 = vpop.f32.mrf.mxu0 }
  0xd3   :  { %480 = vmatmul.f32.gmra.mxu1 %v213_v44 }
  0xd8   :  { %v1691_v52 = vpop.f32.mrf.mxu1 }
  0xda   :  { %v347_v23 = vpop.f32.mrf.mxu0 }
  0xdb   :  { %483 = vmatmul.f32.gmra.mxu1 %v215_v51  ;;  %v917_v51 = vld [vmem:[#allocation12 + $0x78] sm:$0xff] }
  0xdc   :  { %918 = vmatpush.msrb.mxu3 %v917_v51  ;;  %v243_v51 = vunpack.c.h.bf16 %v1743_v26 }
  0xe0   :  { %v1694_v55 = vpop.f32.mrf.mxu1 }
  0xe2   :  { %v350_v14 = vpop.f32.mrf.mxu0 }
  0xe3   :  { %486 = vmatmul.f32.gmra.mxu1 %v217_v32 }
  0xe8   :  { %v1697_v57 = vpop.f32.mrf.mxu1 }
  0xea   :  { %v353_v32 = vpop.f32.mrf.mxu0 }
  0xeb   :  { %489 = vmatmul.f32.gmra.mxu1 %v219_v56  ;;  %v1746_v56 = vld [vmem:[#allocation9 + $0x30] sm:$0xff] }
  0xf0   :  { %v1700_v60 = vpop.f32.mrf.mxu1 }
  0xf3   :  { %492 = vmatmul.f32.gmra.mxu1 %v221_v59  ;;  %v683_v59 = vmul.f32 %v1707_v45, %v1746_v56 }
  0xf8   :  { %v448_v63 = vpop.f32.mrf.mxu1 }
  0xf9   :  { %v449_v0 = vadd.f32 %v448_v63, %v335_v58  ;;  %v916_v58 = vld [vmem:[#allocation12 + $0x70] sm:$0xff] }
  0xfa   :  { %919 = vmatpush.msrb.mxu3 %v916_v58  ;;  %v189_v58 = vld [vmem:[#allocation4 + $0xf8] sm:$0xff] }
  0xfb   :  { %v709_v1 = vadd.f32 %v677_v49, %v449_v0  ;;  %495 = vmatmul.f32.gmra.mxu1 %v223_v62  ;;  %v1751_v49 = vld [vmem:[#allocation4 + $0xd8] sm:$0xff]  ;;  %v915_v0 = vld [vmem:[#allocation12 + $0x68] sm:$0xff] }
  0xfc   :  { %920 = vmatpush.msrb.mxu3 %v915_v0  ;;  %v245_v26 = vunpack.c.h.bf16 %v1751_v49 }
  0xfd   :  { %773 = vmatmul.f32.vlgmr.msrb.gmra.mxu2 %v709_v1  ;;  %v244_v1 = vunpack.c.l.bf16 %v1751_v49 }
  0xff   :  { %415 = vmatmul.f32.gmra.mxu3 %v244_v1 }
 0x100   :  { %v451_v6 = vpop.f32.mrf.mxu1 }
 0x101   :  { %v452_v7 = vadd.f32 %v451_v6, %v338_v39 }
 0x103   :  { %498 = vmatmul.f32.gmra.mxu1 %v225_v3  ;;  %v710_v5 = vadd.f32 %v678_v4, %v452_v7  ;;  %v914_v3 = vld [vmem:[#allocation12 + $0x60] sm:$0xff]  ;;  %v356_v4 = vpop.f32.mrf.mxu0 }
 0x104   :  { %921 = vmatpush.msrb.mxu3 %v914_v3 }
 0x105   :  { %776 = vmatmul.f32.gmra.mxu2 %v710_v5  ;;  %v1759_v5 = vpop.f32.mrf.mxu2 }
 0x108   :  { %v454_v13 = vpop.f32.mrf.mxu1 }
 0x109   :  { %v455_v15 = vadd.f32 %v454_v13, %v341_v2  ;;  %v1754_v2 = vld [vmem:[#allocation9 + $0x38] sm:$0xff] }
 0x10a   :  { %v684_v6 = vmul.f32 %v1707_v45, %v1754_v2  ;;  %v913_v13 = vld [vmem:[#allocation12 + $0x58] sm:$0xff] }
 0x10b   :  { %501 = vmatmul.f32.gmra.mxu1 %v227_v11  ;;  %v711_v10 = vadd.f32 %v679_v12, %v455_v15  ;;  %v1761_v11 = vld [vmem:[#allocation4 + $0xe0] sm:$0xff]  ;;  %922 = vmatpush.msrb.mxu3 %v913_v13 }
 0x10c   :  { %v246_v15 = vunpack.c.l.bf16 %v1761_v11 }
 0x10d   :  { %779 = vmatmul.f32.gmra.mxu2 %v711_v10  ;;  %v1764_v10 = vld [vmem:[#allocation9 + $0x40] sm:$0xff]  ;;  %923 = vmatpush.msrb.mxu3 %v912_v48  ;;  %v903_v48 = vld [vmem:[#allocation12 + $0x8] sm:$0xff] }
 0x10e   :  { %418 = vmatmul.f32.gmra.mxu3 %v246_v15 }
 0x110   :  { %v457_v21 = vpop.f32.mrf.mxu1 }
 0x111   :  { %v458_v24 = vadd.f32 %v457_v21, %v344_v9 }
 0x113   :  { %504 = vmatmul.f32.gmra.mxu1 %v229_v18  ;;  %v712_v16 = vadd.f32 %v680_v19, %v458_v24  ;;  %v239_v18 = vunpack.c.h.bf16 %v1727_v25  ;;  %v685_v19 = vmul.f32 %v1707_v45, %v1764_v10  ;;  %v1770_v24 = vpop.f32.mrf.mxu2  ;;  %v910_v25 = vld [vmem:[#allocation12 + $0x40] sm:$0xff] }
 0x115   :  { %782 = vmatmul.f32.gmra.mxu2 %v712_v16  ;;  %v1772_v16 = vld [vmem:[#allocation4 + $0xe8] sm:$0xff] }
 0x118   :  { %v460_v33 = vpop.f32.mrf.mxu1 }
 0x119   :  { %v461_v35 = vadd.f32 %v460_v33, %v347_v23  ;;  %v1775_v33 = vld [vmem:[#allocation9 + $0x48] sm:$0xff] }
 0x11b   :  { %507 = vmatmul.f32.gmra.mxu1 %v231_v31  ;;  %v713_v38 = vadd.f32 %v681_v22, %v461_v35  ;;  %v911_v31 = vld [vmem:[#allocation12 + $0x48] sm:$0xff]  ;;  %v248_v22 = vunpack.c.l.bf16 %v1772_v16  ;;  %v241_v35 = vunpack.c.h.bf16 %v1735_v37  ;;  %v908_v37 = vld [vmem:[#allocation12 + $0x30] sm:$0xff] }
 0x11c   :  { %924 = vmatpush.msrb.mxu3 %v911_v31 }
 0x11d   :  { %785 = vmatmul.f32.gmra.mxu2 %v713_v38  ;;  %421 = vmatmul.f32.gmra.mxu3 %v248_v22  ;;  %v1816_v22 = vld [vmem:[#allocation9 + $0x70] sm:$0xff] }
 0x11e   :  { %925 = vmatpush.msrb.mxu3 %v910_v25  ;;  %v251_v25 = vunpack.c.h.bf16 %v1781_v41 }
 0x120   :  { %v463_v44 = vpop.f32.mrf.mxu1 }
 0x121   :  { %v464_v47 = vadd.f32 %v463_v44, %v350_v14  ;;  %v250_v44 = vunpack.c.l.bf16 %v1781_v41 }
 0x123   :  { %510 = vmatmul.f32.gmra.mxu1 %v233_v43  ;;  %v714_v50 = vadd.f32 %v682_v29, %v464_v47  ;;  %v909_v29 = vld [vmem:[#allocation12 + $0x38] sm:$0xff]  ;;  %v1784_v47 = vld [vmem:[#allocation9 + $0x50] sm:$0xff] }
 0x124   :  { %926 = vmatpush.msrb.mxu3 %v909_v29 }
 0x125   :  { %788 = vmatmul.f32.gmra.mxu2 %v714_v50  ;;  %v1786_v50 = vpop.f32.mrf.mxu2  ;;  %424 = vmatmul.f32.gmra.mxu3 %v250_v44 }
 0x126   :  { %927 = vmatpush.msrb.mxu3 %v908_v37 }
 0x128   :  { %v466_v39 = vpop.f32.mrf.mxu1 }
 0x129   :  { %v467_v62 = vadd.f32 %v466_v39, %v353_v32  ;;  %v252_v39 = vunpack.c.l.bf16 %v189_v58 }
 0x12b   :  { %513 = vmatmul.f32.gmra.mxu1 %v235_v36  ;;  %v715_v63 = vadd.f32 %v683_v59, %v467_v62  ;;  %v907_v59 = vld [vmem:[#allocation12 + $0x28] sm:$0xff]  ;;  %v1792_v62 = vld [vmem:[#allocation9 + $0x58] sm:$0xff] }
 0x12c   :  { %928 = vmatpush.msrb.mxu3 %v907_v59  ;;  %v688_v1 = vmul.f32 %v1707_v45, %v1792_v62 }
 0x12d   :  { %791 = vmatmul.f32.gmra.mxu2 %v715_v63  ;;  %427 = vmatmul.f32.gmra.mxu3 %v252_v39  ;;  %v906_v63 = vld [vmem:[#allocation12 + $0x20] sm:$0xff]  ;;  %v1794_v0 = vpop.f32.mrf.mxu2 }
 0x12e   :  { %929 = vmatpush.msrb.mxu3 %v906_v63 }
 0x130   :  { %v469_v7 = vpop.f32.mrf.mxu1 }
 0x131   :  { %v470_v9 = vadd.f32 %v469_v7, %v356_v4  ;;  %v904_v7 = vld [vmem:[#allocation12 + $0x10] sm:$0xff] }
 0x133   :  { %516 = vmatmul.f32.gmra.mxu1 %v237_v42  ;;  %v716_v12 = vadd.f32 %v684_v6, %v470_v9  ;;  %v905_v42 = vld [vmem:[#allocation12 + $0x18] sm:$0xff]  ;;  %v1800_v6 = vld [vmem:[#allocation9 + $0x60] sm:$0xff]  ;;  %v247_v9 = vunpack.c.h.bf16 %v1761_v11 }
 0x134   :  { %930 = vmatpush.msrb.mxu3 %v905_v42  ;;  %v689_v49 = vmul.f32 %v1707_v45, %v1800_v6 }
 0x135   :  { %794 = vmatmul.f32.gmra.mxu2 %v716_v12  ;;  %v1805_v13 = vpop.f32.mrf.mxu2 }
 0x136   :  { %931 = vmatpush.msrb.mxu3 %v904_v7 }
 0x138   :  { %v472_v21 = vpop.f32.mrf.mxu1  ;;  %932 = vmatpush.msrb.mxu3 %v903_v48 }
 0x139   :  { %v473_v23 = vadd.f32 %v472_v21, %v1667_v27  ;;  %v686_v27 = vmul.f32 %v1707_v45, %v1775_v33  ;;  %v249_v21 = vunpack.c.h.bf16 %v1772_v16 }
 0x13b   :  { %519 = vmatmul.f32.gmra.mxu1 %v239_v18  ;;  %v717_v28 = vadd.f32 %v685_v19, %v473_v23  ;;  %v1808_v18 = vld [vmem:[#allocation9 + $0x68] sm:$0xff]  ;;  %v902_v19 = vld [vmem:[#allocation12] sm:$0xff] }
 0x13c   :  { %933 = vmatpush.msrb.mxu3 %v902_v19  ;;  %v690_v11 = vmul.f32 %v1707_v45, %v1808_v18 }
 0x13d   :  { %797 = vmatmul.f32.gmra.mxu2 %v717_v28  ;;  %v1814_v31 = vpop.f32.mrf.mxu2 }
 0x140   :  { %v475_v14 = vpop.f32.mrf.mxu1 }
 0x141   :  { %v476_v38 = vadd.f32 %v475_v14, %v1673_v34  ;;  %v687_v34 = vmul.f32 %v1707_v45, %v1784_v47 }
 0x143   :  { %522 = vmatmul.f32.gmra.mxu1 %v241_v35  ;;  %v718_v43 = vadd.f32 %v686_v27, %v476_v38  ;;  %v691_v35 = vmul.f32 %v1707_v45, %v1816_v22 }
 0x145   :  { %800 = vmatmul.f32.gmra.mxu2 %v718_v43  ;;  %v1822_v38 = vpop.f32.mrf.mxu2  ;;  %v253_v43 = vunpack.c.h.bf16 %v189_v58 }
 0x148   :  { %v478_v54 = vpop.f32.mrf.mxu1 }
 0x149   :  { %v479_v32 = vadd.f32 %v478_v54, %v1679_v40 }
 0x14b   :  { %525 = vmatmul.f32.gmra.mxu1 %v243_v51  ;;  %v719_v36 = vadd.f32 %v687_v34, %v479_v32  ;;  %v1829_v51 = vld [vmem:[#allocation9 + $0x80] sm:$0xff] }
 0x14c   :  { %v693_v34 = vmul.f32 %v1707_v45, %v1829_v51 }
 0x14d   :  { %803 = vmatmul.f32.gmra.mxu2 %v719_v36  ;;  %v1836_v36 = vld [vmem:[#allocation9 + $0x88] sm:$0xff] }
 0x150   :  { %v481_v40 = vpop.f32.mrf.mxu1 }
 0x151   :  { %v482_v3 = vadd.f32 %v481_v40, %v1685_v46  ;;  %v1841_v40 = vld [vmem:[#allocation9 + $0x90] sm:$0xff] }
 0x153   :  { %528 = vmatmul.f32.gmra.mxu1 %v245_v26  ;;  %v720_v4 = vadd.f32 %v688_v1, %v482_v3 }
 0x155   :  { %806 = vmatmul.f32.gmra.mxu2 %v720_v4 }
 0x158   :  { %v484_v12 = vpop.f32.mrf.mxu1 }
 0x159   :  { %v485_v15 = vadd.f32 %v484_v12, %v1691_v52 }
 0x15b   :  { %531 = vmatmul.f32.gmra.mxu1 %v247_v9  ;;  %v721_v46 = vadd.f32 %v689_v49, %v485_v15  ;;  %v1846_v49 = vld [vmem:[#allocation9 + $0x98] sm:$0xff] }
 0x15d   :  { %809 = vmatmul.f32.gmra.mxu2 %v721_v46 }
 0x160   :  { %v487_v23 = vpop.f32.mrf.mxu1 }
 0x161   :  { %v488_v28 = vadd.f32 %v487_v23, %v1694_v55  ;;  %v1824_v55 = vld [vmem:[#allocation9 + $0x78] sm:$0xff] }
 0x162   :  { %v692_v29 = vmul.f32 %v1707_v45, %v1824_v55 }
 0x163   :  { %534 = vmatmul.f32.gmra.mxu1 %v249_v21  ;;  %v722_v52 = vadd.f32 %v690_v11, %v488_v28  ;;  %v1851_v21 = vld [vmem:[#allocation9 + $0xa0] sm:$0xff] }
 0x165   :  { %812 = vmatmul.f32.gmra.mxu2 %v722_v52 }
 0x168   :  { %v490_v27 = vpop.f32.mrf.mxu1 }
 0x169   :  { %v491_v16 = vadd.f32 %v490_v27, %v1697_v57  ;;  %v1831_v57 = vpop.f32.mrf.mxu2 }
 0x16b   :  { %537 = vmatmul.f32.gmra.mxu1 %v251_v25  ;;  %v723_v14 = vadd.f32 %v691_v35, %v491_v16  ;;  %v1856_v35 = vld [vmem:[#allocation9 + $0xa8] sm:$0xff] }
 0x16d   :  { %815 = vmatmul.f32.gmra.mxu2 %v723_v14 }
 0x170   :  { %v493_v44 = vpop.f32.mrf.mxu1 }
 0x171   :  { %v494_v41 = vadd.f32 %v493_v44, %v1700_v60  ;;  %v694_v60 = vmul.f32 %v1707_v45, %v1836_v36  ;;  %v1861_v44 = vld [vmem:[#allocation9 + $0xb0] sm:$0xff] }
 0x173   :  { %540 = vmatmul.f32.gmra.mxu1 %v253_v43  ;;  %v724_v37 = vadd.f32 %v692_v29, %v494_v41  ;;  %v407_v41 = vpop.f32.mrf.mxu3 }
 0x175   :  { %818 = vmatmul.f32.gmra.mxu2 %v724_v37 }
 0x178   :  { %v496_v54 = vpop.f32.mrf.mxu1 }
 0x179   :  { %v497_v32 = vadd.f32 %v496_v54, %v1759_v5  ;;  %v695_v5 = vmul.f32 %v1707_v45, %v1841_v40 }
 0x17b   :  { %v725_v58 = vadd.f32 %v693_v34, %v497_v32 }
 0x17d   :  { %821 = vmatmul.f32.gmra.mxu2 %v725_v58 }
 0x180   :  { %v499_v59 = vpop.f32.mrf.mxu1  ;;  %v774_v39 = vpop.f32.mrf.mxu2 }
 0x181   :  { %v500_v63 = vadd.f32 %v499_v59, %v1770_v24  ;;  %v870_v26 = vmax.f32 %v774_v39, 0.0  ;;  %v696_v24 = vmul.f32 %v1707_v45, %v1846_v49  ;;  %v1866_v59 = vld [vmem:[#allocation9 + $0xb8] sm:$0xff] }
 0x182   :  { %v700_v39 = vmul.f32 %v1707_v45, %v1866_v59 }
 0x183   :  { %v726_v1 = vadd.f32 %v694_v60, %v500_v63  ;;  %934 = vmatmul.f32.vlgmr.msrb.gmra.mxu3 %v870_v26  ;;  %v1078_v60 = vld [vmem:[#allocation13 + $0x78] sm:$0xff] }
 0x184   :  { %1079 = vmatpush.msrb.mxu0 %v1078_v60  ;;  %v1883_v60 = vld [vmem:[#allocation9 + $0xd8] sm:$0xff] }
 0x185   :  { %824 = vmatmul.f32.gmra.mxu2 %v726_v1 }
 0x188   :  { %v502_v3 = vpop.f32.mrf.mxu1  ;;  %v777_v4 = vpop.f32.mrf.mxu2 }
 0x189   :  { %v503_v42 = vadd.f32 %v502_v3, %v1786_v50  ;;  %v871_v7 = vmax.f32 %v777_v4, 0.0  ;;  %v697_v50 = vmul.f32 %v1707_v45, %v1851_v21  ;;  %v410_v3 = vpop.f32.mrf.mxu3  ;;  %v1076_v4 = vld [vmem:[#allocation13 + $0x68] sm:$0xff] }
 0x18b   :  { %v727_v9 = vadd.f32 %v695_v5, %v503_v42  ;;  %937 = vmatmul.f32.gmra.mxu3 %v871_v7  ;;  %v1871_v42 = vld [vmem:[#allocation9 + $0xc0] sm:$0xff] }
 0x18c   :  { %v1075_v7 = vld [vmem:[#allocation13 + $0x60] sm:$0xff] }
 0x18d   :  { %827 = vmatmul.f32.gmra.mxu2 %v727_v9  ;;  %v701_v9 = vmul.f32 %v1707_v45, %v1871_v42 }
 0x190   :  { %v505_v12 = vpop.f32.mrf.mxu1  ;;  %v780_v15 = vpop.f32.mrf.mxu2 }
 0x191   :  { %v506_v46 = vadd.f32 %v505_v12, %v1794_v0  ;;  %v872_v48 = vmax.f32 %v780_v15, 0.0  ;;  %v698_v0 = vmul.f32 %v1707_v45, %v1856_v35 }
 0x193   :  { %v728_v19 = vadd.f32 %v696_v24, %v506_v46  ;;  %940 = vmatmul.f32.gmra.mxu3 %v872_v48 }
 0x195   :  { %830 = vmatmul.f32.gmra.mxu2 %v728_v19  ;;  %v1074_v19 = vld [vmem:[#allocation13 + $0x58] sm:$0xff] }
 0x198   :  { %v508_v11 = vpop.f32.mrf.mxu1  ;;  %v783_v23 = vpop.f32.mrf.mxu2 }
 0x199   :  { %v509_v28 = vadd.f32 %v508_v11, %v1805_v13  ;;  %v873_v52 = vmax.f32 %v783_v23, 0.0  ;;  %v699_v13 = vmul.f32 %v1707_v45, %v1861_v44  ;;  %v1073_v11 = vld [vmem:[#allocation13 + $0x50] sm:$0xff] }
 0x19b   :  { %v729_v25 = vadd.f32 %v697_v50, %v509_v28  ;;  %943 = vmatmul.f32.gmra.mxu3 %v873_v52  ;;  %v1875_v50 = vld [vmem:[#allocation9 + $0xc8] sm:$0xff] }
 0x19c   :  { %v702_v23 = vmul.f32 %v1707_v45, %v1875_v50 }
 0x19d   :  { %833 = vmatmul.f32.gmra.mxu2 %v729_v25 }
 0x1a0   :  { %v511_v27 = vpop.f32.mrf.mxu1  ;;  %v786_v16 = vpop.f32.mrf.mxu2 }
 0x1a1   :  { %v512_v14 = vadd.f32 %v511_v27, %v1814_v31  ;;  %v874_v43 = vmax.f32 %v786_v16, 0.0  ;;  %v1077_v31 = vld [vmem:[#allocation13 + $0x70] sm:$0xff]  ;;  %v1072_v16 = vld [vmem:[#allocation13 + $0x48] sm:$0xff] }
 0x1a2   :  { %1080 = vmatpush.msrb.mxu0 %v1077_v31  ;;  %v1069_v31 = vld [vmem:[#allocation13 + $0x30] sm:$0xff] }
 0x1a3   :  { %v730_v29 = vadd.f32 %v698_v0, %v512_v14  ;;  %946 = vmatmul.f32.gmra.mxu3 %v874_v43  ;;  %v1879_v14 = vld [vmem:[#allocation9 + $0xd0] sm:$0xff] }
 0x1a4   :  { %1081 = vmatpush.msrb.mxu0 %v1076_v4  ;;  %v1068_v4 = vld [vmem:[#allocation13 + $0x28] sm:$0xff] }
 0x1a5   :  { %836 = vmatmul.f32.gmra.mxu2 %v730_v29  ;;  %v1071_v29 = vld [vmem:[#allocation13 + $0x40] sm:$0xff] }
 0x1a6   :  { %1082 = vmatpush.msrb.mxu0 %v1075_v7  ;;  %v1887_v7 = vld [vmem:[#allocation9 + $0xe0] sm:$0xff] }
 0x1a8   :  { %v514_v37 = vpop.f32.mrf.mxu1  ;;  %v789_v34 = vpop.f32.mrf.mxu2  ;;  %1083 = vmatpush.msrb.mxu0 %v1074_v19 }
 0x1a9   :  { %v515_v54 = vadd.f32 %v514_v37, %v1822_v38  ;;  %v875_v32 = vmax.f32 %v789_v34, 0.0 }
 0x1aa   :  { %1084 = vmatpush.msrb.mxu0 %v1073_v11 }
 0x1ab   :  { %v731_v58 = vadd.f32 %v699_v13, %v515_v54  ;;  %949 = vmatmul.f32.gmra.mxu3 %v875_v32  ;;  %v703_v13 = vmul.f32 %v1707_v45, %v1879_v14 }
 0x1ac   :  { %1085 = vmatpush.msrb.mxu0 %v1072_v16 }
 0x1ad   :  { %839 = vmatmul.f32.gmra.mxu2 %v731_v58  ;;  %v1070_v58 = vld [vmem:[#allocation13 + $0x38] sm:$0xff] }
 0x1ae   :  { %1086 = vmatpush.msrb.mxu0 %v1071_v29 }
 0x1b0   :  { %v517_v63 = vpop.f32.mrf.mxu1  ;;  %v792_v26 = vpop.f32.mrf.mxu2  ;;  %1087 = vmatpush.msrb.mxu0 %v1070_v58 }
 0x1b1   :  { %v518_v1 = vadd.f32 %v517_v63, %v1831_v57  ;;  %v876_v5 = vmax.f32 %v792_v26, 0.0  ;;  %v413_v57 = vpop.f32.mrf.mxu3 }
 0x1b2   :  { %1088 = vmatpush.msrb.mxu0 %v1069_v31 }
 0x1b3   :  { %v732_v38 = vadd.f32 %v700_v39, %v518_v1  ;;  %952 = vmatmul.f32.gmra.mxu3 %v876_v5  ;;  %v704_v39 = vmul.f32 %v1707_v45, %v1883_v60 }
 0x1b4   :  { %1089 = vmatpush.msrb.mxu0 %v1068_v4 }
 0x1b5   :  { %842 = vmatmul.f32.gmra.mxu2 %v732_v38 }
 0x1b8   :  { %v520_v24 = vpop.f32.mrf.mxu1  ;;  %v795_v12 = vpop.f32.mrf.mxu2 }
 0x1b9   :  { %v521_v15 = vadd.f32 %v520_v24, %v407_v41  ;;  %v877_v46 = vmax.f32 %v795_v12, 0.0  ;;  %v416_v43 = vpop.f32.mrf.mxu3  ;;  %v705_v24 = vmul.f32 %v1707_v45, %v1887_v7 }
 0x1bb   :  { %v733_v48 = vadd.f32 %v701_v9, %v521_v15  ;;  %955 = vmatmul.f32.gmra.mxu3 %v877_v46  ;;  %v1067_v9 = vld [vmem:[#allocation13 + $0x20] sm:$0xff] }
 0x1bc   :  { %1090 = vmatpush.msrb.mxu0 %v1067_v9 }
 0x1bd   :  { %845 = vmatmul.f32.gmra.mxu2 %v733_v48 }
 0x1c0   :  { %v523_v28 = vpop.f32.mrf.mxu1  ;;  %v798_v52 = vpop.f32.mrf.mxu2 }
 0x1c1   :  { %v524_v25 = vadd.f32 %v523_v28, %v410_v3  ;;  %v878_v0 = vmax.f32 %v798_v52, 0.0  ;;  %v419_v63 = vpop.f32.mrf.mxu3  ;;  %v1891_v28 = vld [vmem:[#allocation9 + $0xe8] sm:$0xff] }
 0x1c2   :  { %v706_v52 = vmul.f32 %v1707_v45, %v1891_v28 }
 0x1c3   :  { %v734_v27 = vadd.f32 %v702_v23, %v524_v25  ;;  %958 = vmatmul.f32.gmra.mxu3 %v878_v0  ;;  %v1065_v23 = vld [vmem:[#allocation13 + $0x10] sm:$0xff] }
 0x1c5   :  { %848 = vmatmul.f32.gmra.mxu2 %v734_v27 }
 0x1c8   :  { %v526_v41 = vpop.f32.mrf.mxu1  ;;  %v801_v37 = vpop.f32.mrf.mxu2 }
 0x1c9   :  { %v527_v34 = vadd.f32 %v526_v41, %v413_v57  ;;  %v879_v54 = vmax.f32 %v801_v37, 0.0  ;;  %v1066_v57 = vld [vmem:[#allocation13 + $0x18] sm:$0xff]  ;;  %v422_v19 = vpop.f32.mrf.mxu3  ;;  %v1895_v37 = vld [vmem:[#allocation9 + $0xf0] sm:$0xff] }
 0x1ca   :  { %1091 = vmatpush.msrb.mxu0 %v1066_v57 }
 0x1cb   :  { %v735_v32 = vadd.f32 %v703_v13, %v527_v34  ;;  %961 = vmatmul.f32.gmra.mxu3 %v879_v54  ;;  %v1063_v13 = vld [vmem:[#allocation13] sm:$0xff]  ;;  %v707_v34 = vmul.f32 %v1707_v45, %v1895_v37 }
 0x1cc   :  { %1092 = vmatpush.msrb.mxu0 %v1065_v23 }
 0x1cd   :  { %851 = vmatmul.f32.gmra.mxu2 %v735_v32 }
 0x1d0   :  { %v529_v26 = vpop.f32.mrf.mxu1  ;;  %v804_v1 = vpop.f32.mrf.mxu2 }
 0x1d1   :  { %v530_v5 = vadd.f32 %v529_v26, %v416_v43  ;;  %v880_v3 = vmax.f32 %v804_v1, 0.0  ;;  %v1064_v43 = vld [vmem:[#allocation13 + $0x8] sm:$0xff]  ;;  %v425_v41 = vpop.f32.mrf.mxu3 }
 0x1d2   :  { %1093 = vmatpush.msrb.mxu0 %v1064_v43 }
 0x1d3   :  { %v736_v38 = vadd.f32 %v704_v39, %v530_v5  ;;  %964 = vmatmul.f32.gmra.mxu3 %v880_v3 }
 0x1d4   :  { %1094 = vmatpush.msrb.mxu0 %v1063_v13 }
 0x1d5   :  { %854 = vmatmul.f32.gmra.mxu2 %v736_v38 }
 0x1d8   :  { %v532_v12 = vpop.f32.mrf.mxu1  ;;  %v807_v15 = vpop.f32.mrf.mxu2 }
 0x1d9   :  { %v533_v46 = vadd.f32 %v532_v12, %v419_v63  ;;  %v881_v48 = vmax.f32 %v807_v15, 0.0  ;;  %v1899_v63 = vld [vmem:[#allocation9 + $0xf8] sm:$0xff]  ;;  %v428_v26 = vpop.f32.mrf.mxu3 }
 0x1da   :  { %v708_v1 = vmul.f32 %v1707_v45, %v1899_v63 }
 0x1db   :  { %v737_v11 = vadd.f32 %v705_v24, %v533_v46  ;;  %967 = vmatmul.f32.gmra.mxu3 %v881_v48 }
 0x1dd   :  { %857 = vmatmul.f32.gmra.mxu2 %v737_v11 }
 0x1e0   :  { %v535_v25 = vpop.f32.mrf.mxu1  ;;  %v810_v0 = vpop.f32.mrf.mxu2 }
 0x1e1   :  { %v536_v27 = vadd.f32 %v535_v25, %v422_v19  ;;  %v882_v16 = vmax.f32 %v810_v0, 0.0 }
 0x1e3   :  { %v738_v29 = vadd.f32 %v706_v52, %v536_v27  ;;  %970 = vmatmul.f32.gmra.mxu3 %v882_v16 }
 0x1e5   :  { %860 = vmatmul.f32.gmra.mxu2 %v738_v29 }
 0x1e8   :  { %v538_v54 = vpop.f32.mrf.mxu1  ;;  %v813_v32 = vpop.f32.mrf.mxu2 }
 0x1e9   :  { %v539_v58 = vadd.f32 %v538_v54, %v425_v41  ;;  %v883_v31 = vmax.f32 %v813_v32, 0.0 }
 0x1eb   :  { %v739_v39 = vadd.f32 %v707_v34, %v539_v58  ;;  %973 = vmatmul.f32.gmra.mxu3 %v883_v31 }
 0x1ed   :  { %863 = vmatmul.f32.gmra.mxu2 %v739_v39 }
 0x1f0   :  { %v541_v5 = vpop.f32.mrf.mxu1  ;;  %v816_v3 = vpop.f32.mrf.mxu2 }
 0x1f1   :  { %v542_v38 = vadd.f32 %v541_v5, %v428_v26  ;;  %v884_v4 = vmax.f32 %v816_v3, 0.0 }
 0x1f3   :  { %v740_v9 = vadd.f32 %v708_v1, %v542_v38  ;;  %976 = vmatmul.f32.gmra.mxu3 %v884_v4 }
 0x1f5   :  { %866 = vmatmul.f32.gmra.mxu2 %v740_v9 }
 0x1f8   :  { %v819_v24 = vpop.f32.mrf.mxu2 }
 0x1f9   :  { %v885_v12 = vmax.f32 %v819_v24, 0.0 }
 0x1fb   :  { %979 = vmatmul.f32.gmra.mxu3 %v885_v12 }
 0x200   :  { %v822_v15 = vpop.f32.mrf.mxu2 }
 0x201   :  { %v886_v46 = vmax.f32 %v822_v15, 0.0 }
 0x203   :  { %982 = vmatmul.f32.gmra.mxu3 %v886_v46 }
 0x206   :  { %v935_v48 = vpop.f32.mrf.mxu3 }
 0x207   :  { %v1031_v57 = vmax.f32 %v935_v48, 0.0 }
 0x208   :  { %v825_v19 = vpop.f32.mrf.mxu2 }
 0x209   :  { %v887_v11 = vmax.f32 %v825_v19, 0.0  ;;  %1095 = vmatmul.f32.vlgmr.msrb.gmra.mxu0 %v1031_v57 }
 0x20b   :  { %985 = vmatmul.f32.gmra.mxu3 %v887_v11 }
 0x20e   :  { %v938_v45 = vpop.f32.mrf.mxu3 }
 0x20f   :  { %v1032_v23 = vmax.f32 %v938_v45, 0.0 }
 0x210   :  { %v828_v52 = vpop.f32.mrf.mxu2 }
 0x211   :  { %v888_v25 = vmax.f32 %v828_v52, 0.0  ;;  %1098 = vmatmul.f32.gmra.mxu0 %v1032_v23 }
 0x213   :  { %988 = vmatmul.f32.gmra.mxu3 %v888_v25 }
 0x216   :  { %v941_v0 = vpop.f32.mrf.mxu3 }
 0x217   :  { %v1033_v27 = vmax.f32 %v941_v0, 0.0 }
 0x218   :  { %v831_v16 = vpop.f32.mrf.mxu2 }
 0x219   :  { %v889_v43 = vmax.f32 %v831_v16, 0.0  ;;  %1101 = vmatmul.f32.gmra.mxu0 %v1033_v27 }
 0x21b   :  { %991 = vmatmul.f32.gmra.mxu3 %v889_v43 }
 0x21e   :  { %v944_v29 = vpop.f32.mrf.mxu3 }
 0x21f   :  { %v1034_v13 = vmax.f32 %v944_v29, 0.0 }
 0x220   :  { %v834_v41 = vpop.f32.mrf.mxu2 }
 0x221   :  { %v890_v34 = vmax.f32 %v834_v41, 0.0  ;;  %1104 = vmatmul.f32.gmra.mxu0 %v1034_v13 }
 0x223   :  { %994 = vmatmul.f32.gmra.mxu3 %v890_v34 }
 0x226   :  { %v947_v54 = vpop.f32.mrf.mxu3 }
 0x227   :  { %v1035_v32 = vmax.f32 %v947_v54, 0.0 }
 0x228   :  { %v837_v58 = vpop.f32.mrf.mxu2 }
 0x229   :  { %v891_v31 = vmax.f32 %v837_v58, 0.0  ;;  %1107 = vmatmul.f32.gmra.mxu0 %v1035_v32 }
 0x22b   :  { %997 = vmatmul.f32.gmra.mxu3 %v891_v31 }
 0x22e   :  { %v950_v39 = vpop.f32.mrf.mxu3 }
 0x22f   :  { %v1036_v26 = vmax.f32 %v950_v39, 0.0 }
 0x230   :  { %v840_v1 = vpop.f32.mrf.mxu2 }
 0x231   :  { %v892_v5 = vmax.f32 %v840_v1, 0.0  ;;  %1110 = vmatmul.f32.gmra.mxu0 %v1036_v26 }
 0x233   :  { %1000 = vmatmul.f32.gmra.mxu3 %v892_v5 }
 0x236   :  { %v953_v3 = vpop.f32.mrf.mxu3 }
 0x237   :  { %v1037_v38 = vmax.f32 %v953_v3, 0.0 }
 0x238   :  { %v843_v4 = vpop.f32.mrf.mxu2 }
 0x239   :  { %v893_v9 = vmax.f32 %v843_v4, 0.0  ;;  %1113 = vmatmul.f32.gmra.mxu0 %v1037_v38 }
 0x23b   :  { %1003 = vmatmul.f32.gmra.mxu3 %v893_v9 }
 0x23e   :  { %v956_v24 = vpop.f32.mrf.mxu3 }
 0x23f   :  { %v1038_v12 = vmax.f32 %v956_v24, 0.0 }
 0x240   :  { %v846_v15 = vpop.f32.mrf.mxu2 }
 0x241   :  { %v894_v46 = vmax.f32 %v846_v15, 0.0  ;;  %1116 = vmatmul.f32.gmra.mxu0 %v1038_v12 }
 0x243   :  { %1006 = vmatmul.f32.gmra.mxu3 %v894_v46 }
 0x246   :  { %v959_v48 = vpop.f32.mrf.mxu3 }
 0x247   :  { %v1039_v57 = vmax.f32 %v959_v48, 0.0 }
 0x248   :  { %v849_v19 = vpop.f32.mrf.mxu2 }
 0x249   :  { %v895_v11 = vmax.f32 %v849_v19, 0.0  ;;  %1119 = vmatmul.f32.gmra.mxu0 %v1039_v57 }
 0x24b   :  { %1009 = vmatmul.f32.gmra.mxu3 %v895_v11 }
 0x24e   :  { %v962_v45 = vpop.f32.mrf.mxu3 }
 0x24f   :  { %v1040_v23 = vmax.f32 %v962_v45, 0.0 }
 0x250   :  { %v852_v52 = vpop.f32.mrf.mxu2 }
 0x251   :  { %v896_v25 = vmax.f32 %v852_v52, 0.0  ;;  %1122 = vmatmul.f32.gmra.mxu0 %v1040_v23 }
 0x253   :  { %1012 = vmatmul.f32.gmra.mxu3 %v896_v25 }
 0x256   :  { %v965_v0 = vpop.f32.mrf.mxu3 }
 0x257   :  { %v1041_v27 = vmax.f32 %v965_v0, 0.0 }
 0x258   :  { %v855_v16 = vpop.f32.mrf.mxu2 }
 0x259   :  { %v897_v43 = vmax.f32 %v855_v16, 0.0  ;;  %1125 = vmatmul.f32.gmra.mxu0 %v1041_v27 }
 0x25b   :  { %1015 = vmatmul.f32.gmra.mxu3 %v897_v43 }
 0x25e   :  { %v968_v29 = vpop.f32.mrf.mxu3 }
 0x25f   :  { %v1042_v13 = vmax.f32 %v968_v29, 0.0 }
 0x260   :  { %v858_v41 = vpop.f32.mrf.mxu2 }
 0x261   :  { %v898_v34 = vmax.f32 %v858_v41, 0.0  ;;  %1128 = vmatmul.f32.gmra.mxu0 %v1042_v13 }
 0x263   :  { %1018 = vmatmul.f32.gmra.mxu3 %v898_v34 }
 0x266   :  { %v971_v54 = vpop.f32.mrf.mxu3 }
 0x267   :  { %v1043_v32 = vmax.f32 %v971_v54, 0.0 }
 0x268   :  { %v861_v58 = vpop.f32.mrf.mxu2 }
 0x269   :  { %v899_v31 = vmax.f32 %v861_v58, 0.0  ;;  %1131 = vmatmul.f32.gmra.mxu0 %v1043_v32 }
 0x26b   :  { %1021 = vmatmul.f32.gmra.mxu3 %v899_v31 }
 0x26e   :  { %v974_v39 = vpop.f32.mrf.mxu3 }
 0x26f   :  { %v1044_v26 = vmax.f32 %v974_v39, 0.0 }
 0x270   :  { %v864_v1 = vpop.f32.mrf.mxu2 }
 0x271   :  { %v900_v5 = vmax.f32 %v864_v1, 0.0  ;;  %1134 = vmatmul.f32.gmra.mxu0 %v1044_v26 }
 0x273   :  { %1024 = vmatmul.f32.gmra.mxu3 %v900_v5 }
 0x276   :  { %v977_v3 = vpop.f32.mrf.mxu3 }
 0x277   :  { %v1045_v38 = vmax.f32 %v977_v3, 0.0 }
 0x278   :  { %v867_v4 = vpop.f32.mrf.mxu2 }
 0x279   :  { %v901_v9 = vmax.f32 %v867_v4, 0.0  ;;  %1137 = vmatmul.f32.gmra.mxu0 %v1045_v38 }
 0x27b   :  { %1027 = vmatmul.f32.gmra.mxu3 %v901_v9 }
 0x27e   :  { %v980_v24 = vpop.f32.mrf.mxu3 }
 0x27f   :  { %v1046_v12 = vmax.f32 %v980_v24, 0.0 }
 0x281   :  { %1140 = vmatmul.f32.gmra.mxu0 %v1046_v12 }
 0x286   :  { %v983_v15 = vpop.f32.mrf.mxu3  ;;  %v1096_v46 = vpop.f32.mrf.mxu0 }
 0x287   :  { %v1047_v48 = vmax.f32 %v983_v15, 0.0  ;;  %v1192_v57 = vmax.f32 %v1096_v46, 0.0 }
 0x289   :  { %v1224_v19 = vadd.f32 %v1192_v57, %v1702_v61  ;;  %1143 = vmatmul.f32.gmra.mxu0 %v1047_v48 }
 0x28b   :  { %1256 = vst [vmem:[#allocation15] sm:$0xff] %v1224_v19 }
 0x28e   :  { %v986_v11 = vpop.f32.mrf.mxu3  ;;  %v1099_v45 = vpop.f32.mrf.mxu0 }
 0x28f   :  { %v1048_v23 = vmax.f32 %v986_v11, 0.0  ;;  %v1193_v52 = vmax.f32 %v1099_v45, 0.0 }
 0x291   :  { %v1225_v25 = vadd.f32 %v1193_v52, %v1712_v53  ;;  %1146 = vmatmul.f32.gmra.mxu0 %v1048_v23 }
 0x293   :  { %1257 = vst [vmem:[#allocation15 + $0x8] sm:$0xff] %v1225_v25 }
 0x296   :  { %v989_v0 = vpop.f32.mrf.mxu3  ;;  %v1102_v27 = vpop.f32.mrf.mxu0 }
 0x297   :  { %v1049_v16 = vmax.f32 %v989_v0, 0.0  ;;  %v1194_v43 = vmax.f32 %v1102_v27, 0.0 }
 0x299   :  { %v1226_v29 = vadd.f32 %v1194_v43, %v1717_v8  ;;  %1149 = vmatmul.f32.gmra.mxu0 %v1049_v16 }
 0x29b   :  { %1258 = vst [vmem:[#allocation15 + $0x10] sm:$0xff] %v1226_v29 }
 0x29e   :  { %v992_v13 = vpop.f32.mrf.mxu3  ;;  %v1105_v61 = vpop.f32.mrf.mxu0 }
 0x29f   :  { %v1050_v41 = vmax.f32 %v992_v13, 0.0  ;;  %v1195_v34 = vmax.f32 %v1105_v61, 0.0 }
 0x2a1   :  { %v1227_v54 = vadd.f32 %v1195_v34, %v1722_v17  ;;  %1152 = vmatmul.f32.gmra.mxu0 %v1050_v41 }
 0x2a3   :  { %1259 = vst [vmem:[#allocation15 + $0x18] sm:$0xff] %v1227_v54 }
 0x2a6   :  { %v995_v32 = vpop.f32.mrf.mxu3  ;;  %v1108_v53 = vpop.f32.mrf.mxu0 }
 0x2a7   :  { %v1051_v58 = vmax.f32 %v995_v32, 0.0  ;;  %v1196_v31 = vmax.f32 %v1108_v53, 0.0 }
 0x2a9   :  { %v1228_v39 = vadd.f32 %v1196_v31, %v1730_v30  ;;  %1155 = vmatmul.f32.gmra.mxu0 %v1051_v58 }
 0x2ab   :  { %1260 = vst [vmem:[#allocation15 + $0x20] sm:$0xff] %v1228_v39 }
 0x2ae   :  { %v998_v26 = vpop.f32.mrf.mxu3  ;;  %v1111_v8 = vpop.f32.mrf.mxu0 }
 0x2af   :  { %v1052_v1 = vmax.f32 %v998_v26, 0.0  ;;  %v1197_v5 = vmax.f32 %v1111_v8, 0.0 }
 0x2b1   :  { %v1229_v3 = vadd.f32 %v1197_v5, %v1738_v20  ;;  %1158 = vmatmul.f32.gmra.mxu0 %v1052_v1 }
 0x2b3   :  { %1261 = vst [vmem:[#allocation15 + $0x28] sm:$0xff] %v1229_v3 }
 0x2b6   :  { %v1001_v38 = vpop.f32.mrf.mxu3  ;;  %v1114_v17 = vpop.f32.mrf.mxu0 }
 0x2b7   :  { %v1053_v4 = vmax.f32 %v1001_v38, 0.0  ;;  %v1198_v9 = vmax.f32 %v1114_v17, 0.0 }
 0x2b9   :  { %v1230_v24 = vadd.f32 %v1198_v9, %v1746_v56  ;;  %1161 = vmatmul.f32.gmra.mxu0 %v1053_v4 }
 0x2bb   :  { %1262 = vst [vmem:[#allocation15 + $0x30] sm:$0xff] %v1230_v24 }
 0x2be   :  { %v1004_v12 = vpop.f32.mrf.mxu3  ;;  %v1117_v30 = vpop.f32.mrf.mxu0 }
 0x2bf   :  { %v1054_v15 = vmax.f32 %v1004_v12, 0.0  ;;  %v1199_v46 = vmax.f32 %v1117_v30, 0.0 }
 0x2c1   :  { %v1231_v48 = vadd.f32 %v1199_v46, %v1754_v2  ;;  %1164 = vmatmul.f32.gmra.mxu0 %v1054_v15 }
 0x2c3   :  { %1263 = vst [vmem:[#allocation15 + $0x38] sm:$0xff] %v1231_v48 }
 0x2c6   :  { %v1007_v57 = vpop.f32.mrf.mxu3  ;;  %v1120_v20 = vpop.f32.mrf.mxu0 }
 0x2c7   :  { %v1055_v19 = vmax.f32 %v1007_v57, 0.0  ;;  %v1200_v11 = vmax.f32 %v1120_v20, 0.0 }
 0x2c9   :  { %v1232_v45 = vadd.f32 %v1200_v11, %v1764_v10  ;;  %1167 = vmatmul.f32.gmra.mxu0 %v1055_v19 }
 0x2cb   :  { %1264 = vst [vmem:[#allocation15 + $0x40] sm:$0xff] %v1232_v45 }
 0x2ce   :  { %v1010_v23 = vpop.f32.mrf.mxu3  ;;  %v1123_v56 = vpop.f32.mrf.mxu0 }
 0x2cf   :  { %v1056_v52 = vmax.f32 %v1010_v23, 0.0  ;;  %v1201_v25 = vmax.f32 %v1123_v56, 0.0 }
 0x2d1   :  { %v1233_v0 = vadd.f32 %v1201_v25, %v1775_v33  ;;  %1170 = vmatmul.f32.gmra.mxu0 %v1056_v52 }
 0x2d3   :  { %1265 = vst [vmem:[#allocation15 + $0x48] sm:$0xff] %v1233_v0 }
 0x2d6   :  { %v1013_v27 = vpop.f32.mrf.mxu3  ;;  %v1126_v2 = vpop.f32.mrf.mxu0 }
 0x2d7   :  { %v1057_v16 = vmax.f32 %v1013_v27, 0.0  ;;  %v1202_v43 = vmax.f32 %v1126_v2, 0.0 }
 0x2d9   :  { %v1234_v29 = vadd.f32 %v1202_v43, %v1784_v47  ;;  %1173 = vmatmul.f32.gmra.mxu0 %v1057_v16 }
 0x2db   :  { %1266 = vst [vmem:[#allocation15 + $0x50] sm:$0xff] %v1234_v29 }
 0x2de   :  { %v1016_v13 = vpop.f32.mrf.mxu3  ;;  %v1129_v10 = vpop.f32.mrf.mxu0 }
 0x2df   :  { %v1058_v61 = vmax.f32 %v1016_v13, 0.0  ;;  %v1203_v41 = vmax.f32 %v1129_v10, 0.0 }
 0x2e1   :  { %v1235_v34 = vadd.f32 %v1203_v41, %v1792_v62  ;;  %1176 = vmatmul.f32.gmra.mxu0 %v1058_v61 }
 0x2e3   :  { %1267 = vst [vmem:[#allocation15 + $0x58] sm:$0xff] %v1235_v34 }
 0x2e6   :  { %v1019_v54 = vpop.f32.mrf.mxu3  ;;  %v1132_v33 = vpop.f32.mrf.mxu0 }
 0x2e7   :  { %v1059_v32 = vmax.f32 %v1019_v54, 0.0  ;;  %v1204_v53 = vmax.f32 %v1132_v33, 0.0 }
 0x2e9   :  { %v1236_v58 = vadd.f32 %v1204_v53, %v1800_v6  ;;  %1179 = vmatmul.f32.gmra.mxu0 %v1059_v32 }
 0x2eb   :  { %1268 = vst [vmem:[#allocation15 + $0x60] sm:$0xff] %v1236_v58 }
 0x2ee   :  { %v1022_v31 = vpop.f32.mrf.mxu3  ;;  %v1135_v47 = vpop.f32.mrf.mxu0 }
 0x2ef   :  { %v1060_v39 = vmax.f32 %v1022_v31, 0.0  ;;  %v1205_v26 = vmax.f32 %v1135_v47, 0.0 }
 0x2f1   :  { %v1237_v8 = vadd.f32 %v1205_v26, %v1808_v18  ;;  %1182 = vmatmul.f32.gmra.mxu0 %v1060_v39 }
 0x2f3   :  { %1269 = vst [vmem:[#allocation15 + $0x68] sm:$0xff] %v1237_v8 }
 0x2f6   :  { %v1025_v1 = vpop.f32.mrf.mxu3  ;;  %v1138_v62 = vpop.f32.mrf.mxu0 }
 0x2f7   :  { %v1061_v5 = vmax.f32 %v1025_v1, 0.0  ;;  %v1206_v3 = vmax.f32 %v1138_v62, 0.0 }
 0x2f9   :  { %v1238_v38 = vadd.f32 %v1206_v3, %v1816_v22  ;;  %1185 = vmatmul.f32.gmra.mxu0 %v1061_v5 }
 0x2fb   :  { %1270 = vst [vmem:[#allocation15 + $0x70] sm:$0xff] %v1238_v38 }
 0x2fe   :  { %v1028_v17 = vpop.f32.mrf.mxu3  ;;  %v1141_v6 = vpop.f32.mrf.mxu0 }
 0x2ff   :  { %v1062_v4 = vmax.f32 %v1028_v17, 0.0  ;;  %v1207_v9 = vmax.f32 %v1141_v6, 0.0 }
 0x301   :  { %v1239_v24 = vadd.f32 %v1207_v9, %v1824_v55  ;;  %1188 = vmatmul.f32.gmra.mxu0 %v1062_v4 }
 0x303   :  { %1271 = vst [vmem:[#allocation15 + $0x78] sm:$0xff] %v1239_v24 }
 0x306   :  { %v1144_v12 = vpop.f32.mrf.mxu0 }
 0x307   :  { %v1208_v18 = vmax.f32 %v1144_v12, 0.0 }
 0x309   :  { %v1240_v30 = vadd.f32 %v1208_v18, %v1829_v51 }
 0x30b   :  { %1272 = vst [vmem:[#allocation15 + $0x80] sm:$0xff] %v1240_v30 }
 0x30e   :  { %v1147_v15 = vpop.f32.mrf.mxu0 }
 0x30f   :  { %v1209_v46 = vmax.f32 %v1147_v15, 0.0 }
 0x311   :  { %v1241_v48 = vadd.f32 %v1209_v46, %v1836_v36 }
 0x313   :  { %1273 = vst [vmem:[#allocation15 + $0x88] sm:$0xff] %v1241_v48 }
 0x316   :  { %v1150_v22 = vpop.f32.mrf.mxu0 }
 0x317   :  { %v1210_v57 = vmax.f32 %v1150_v22, 0.0 }
 0x319   :  { %v1242_v20 = vadd.f32 %v1210_v57, %v1841_v40 }
 0x31b   :  { %1274 = vst [vmem:[#allocation15 + $0x90] sm:$0xff] %v1242_v20 }
 0x31e   :  { %v1153_v19 = vpop.f32.mrf.mxu0 }
 0x31f   :  { %v1211_v11 = vmax.f32 %v1153_v19, 0.0 }
 0x321   :  { %v1243_v55 = vadd.f32 %v1211_v11, %v1846_v49 }
 0x323   :  { %1275 = vst [vmem:[#allocation15 + $0x98] sm:$0xff] %v1243_v55 }
 0x326   :  { %v1156_v45 = vpop.f32.mrf.mxu0 }
 0x327   :  { %v1212_v23 = vmax.f32 %v1156_v45, 0.0 }
 0x329   :  { %v1244_v51 = vadd.f32 %v1212_v23, %v1851_v21 }
 0x32b   :  { %1276 = vst [vmem:[#allocation15 + $0xa0] sm:$0xff] %v1244_v51 }
 0x32e   :  { %v1159_v56 = vpop.f32.mrf.mxu0 }
 0x32f   :  { %v1213_v52 = vmax.f32 %v1159_v56, 0.0 }
 0x331   :  { %v1245_v36 = vadd.f32 %v1213_v52, %v1856_v35 }
 0x333   :  { %1277 = vst [vmem:[#allocation15 + $0xa8] sm:$0xff] %v1245_v36 }
 0x336   :  { %v1162_v25 = vpop.f32.mrf.mxu0 }
 0x337   :  { %v1214_v0 = vmax.f32 %v1162_v25, 0.0 }
 0x339   :  { %v1246_v40 = vadd.f32 %v1214_v0, %v1861_v44 }
 0x33b   :  { %1278 = vst [vmem:[#allocation15 + $0xb0] sm:$0xff] %v1246_v40 }
 0x33e   :  { %v1165_v27 = vpop.f32.mrf.mxu0 }
 0x33f   :  { %v1215_v2 = vmax.f32 %v1165_v27, 0.0 }
 0x341   :  { %v1247_v49 = vadd.f32 %v1215_v2, %v1866_v59 }
 0x343   :  { %1279 = vst [vmem:[#allocation15 + $0xb8] sm:$0xff] %v1247_v49 }
 0x346   :  { %v1168_v16 = vpop.f32.mrf.mxu0 }
 0x347   :  { %v1216_v43 = vmax.f32 %v1168_v16, 0.0 }
 0x349   :  { %v1248_v21 = vadd.f32 %v1216_v43, %v1871_v42 }
 0x34b   :  { %1280 = vst [vmem:[#allocation15 + $0xc0] sm:$0xff] %v1248_v21 }
 0x34e   :  { %v1171_v29 = vpop.f32.mrf.mxu0 }
 0x34f   :  { %v1217_v13 = vmax.f32 %v1171_v29, 0.0 }
 0x351   :  { %v1249_v35 = vadd.f32 %v1217_v13, %v1875_v50 }
 0x353   :  { %1281 = vst [vmem:[#allocation15 + $0xc8] sm:$0xff] %v1249_v35 }
 0x356   :  { %v1174_v10 = vpop.f32.mrf.mxu0 }
 0x357   :  { %v1218_v61 = vmax.f32 %v1174_v10, 0.0 }
 0x359   :  { %v1250_v44 = vadd.f32 %v1218_v61, %v1879_v14 }
 0x35b   :  { %1282 = vst [vmem:[#allocation15 + $0xd0] sm:$0xff] %v1250_v44 }
 0x35e   :  { %v1177_v41 = vpop.f32.mrf.mxu0 }
 0x35f   :  { %v1219_v34 = vmax.f32 %v1177_v41, 0.0 }
 0x361   :  { %v1251_v59 = vadd.f32 %v1219_v34, %v1883_v60 }
 0x363   :  { %1283 = vst [vmem:[#allocation15 + $0xd8] sm:$0xff] %v1251_v59 }
 0x366   :  { %v1180_v54 = vpop.f32.mrf.mxu0 }
 0x367   :  { %v1220_v33 = vmax.f32 %v1180_v54, 0.0 }
 0x369   :  { %v1252_v42 = vadd.f32 %v1220_v33, %v1887_v7 }
 0x36b   :  { %1284 = vst [vmem:[#allocation15 + $0xe0] sm:$0xff] %v1252_v42 }
 0x36e   :  { %v1183_v32 = vpop.f32.mrf.mxu0 }
 0x36f   :  { %v1221_v53 = vmax.f32 %v1183_v32, 0.0 }
 0x371   :  { %v1253_v50 = vadd.f32 %v1221_v53, %v1891_v28 }
 0x373   :  { %1285 = vst [vmem:[#allocation15 + $0xe8] sm:$0xff] %v1253_v50 }
 0x376   :  { %v1186_v58 = vpop.f32.mrf.mxu0 }
 0x377   :  { %v1222_v31 = vmax.f32 %v1186_v58, 0.0 }
 0x379   :  { %v1254_v14 = vadd.f32 %v1222_v31, %v1895_v37 }
 0x37b   :  { %1286 = vst [vmem:[#allocation15 + $0xf0] sm:$0xff] %v1254_v14 }
 0x37e   :  { %v1189_v47 = vpop.f32.mrf.mxu0 }
 0x37f   :  { %v1223_v60 = vmax.f32 %v1189_v47, 0.0 }
 0x381   :  { %v1255_v7 = vadd.f32 %v1223_v60, %v1899_v63 }
 0x383   :  { %1287 = vst [vmem:[#allocation15 + $0xf8] sm:$0xff] %v1255_v7 }
 0x384   :  { %1300 = dma.vmem_to_hbm [thread:$0]  %s1293_s29, 4096, %s1295_s11, [#allocation6], %s1546_s9, %s1546_s9, %s1547_s10  }
 0x385   :  { %1543 = dma.done.wait [#allocation6], 4096  }
 0x386   :  { %1544 = vsyncadd [#allocation6], 4294963200 }
 0x387   :  { %1305 = vsyncpa [#allocation5], 1 }
 0x388   :  { %1306 = vsyncpa [#allocation8], 1 }
 0x389   :  { %1307 = vsyncpa [#allocation11], 1 }
 0x38a   :  { %1308 = vsyncpa [#allocation14], 1 }
 0x38b   :  { %1309 = vsyncpa [#allocation6], 1 }

</bundles_post_ra>
